<compile_context>
chip_gen: v6e
topology: v6e:2x2x1
jax: 0.10.0
libtpu: 0.0.40
codegen_flags: <defaults>
</compile_context>

<pallas_src>
import jax
import jax.numpy as jnp
import numpy as np
from jax.experimental import pallas as pl
from jax.experimental.pallas import tpu as pltpu

L = 500        # torch hidden size after fc
LP = 512       # L padded to a lane multiple (4 x 128)
D = 128        # attention hidden size
K = 1          # attention heads
F_IN = 2048    # instance feature size
N_CLS = 10     # number of sigmoid classifiers


def gated_attention_kernel(
    x_ref,       # (N, 2048)   f32
    wfc_ref,     # (2048, 512) bf16
    bfc_ref,     # (1, 512)    f32
    wvu_ref,     # (512, 256)  bf16   (V | U fused column-wise)
    bvu_ref,     # (1, 256)    f32
    watt_ref,    # (1, 128)    f32    (attention weight as a row vector)
    batt_ref,    # (1, 1)      f32
    wcls_ref,    # (512, 10)   f32
    bcls_ref,    # (1, 10)     f32
    prob_ref,    # out: (1, 10)  f32
    attn_ref,    # out: (N, 1)   f32
):
    x_bf = x_ref[...].astype(jnp.bfloat16)

    # H = ReLU(x @ W_fc + b_fc)                       (N, 512) f32
    # (padded columns 500:512 are ReLU(0 + 0) = 0, so downstream math is exact)
    h = jnp.dot(x_bf, wfc_ref[...], preferred_element_type=jnp.float32) + bfc_ref[...]
    h = jnp.maximum(h, 0.0)

    # Fused gated-attention branches: one (N,512)@(512,256) matmul
    vu = (
        jnp.dot(h.astype(jnp.bfloat16), wvu_ref[...],
                preferred_element_type=jnp.float32)
        + bvu_ref[...]
    )
    a_v = jnp.tanh(vu[:, :D])
    a_u = jax.nn.sigmoid(vu[:, D:])
    gate = a_v * a_u                                  # (N, 128) f32

    # Attention logits via VPU multiply + XLU lane reduce
    # (avoids a 1-lane-wide MXU matmul / result-tile drain)
    a_logit = jnp.sum(gate * watt_ref[...], axis=-1, keepdims=True) + batt_ref[...]

    # softmax over the instance axis (dim=1 after the transpose in torch)
    a_max = jnp.max(a_logit, axis=0, keepdims=True)
    a_exp = jnp.exp(a_logit - a_max)
    attn = a_exp * pl.reciprocal(jnp.sum(a_exp, axis=0, keepdims=True), approx=False)
    attn_ref[...] = attn                              # (N, 1); transposed in wrapper

    # Bag embedding M = A @ H as a weighted sublane-reduce sum (no transpose)
    m_bag = jnp.sum(attn * h, axis=0, keepdims=True)  # (1, 512)

    # 10 independent sigmoid classifiers, batched as one (512, 10) matmul
    logits = (
        jnp.dot(m_bag, wcls_ref[...], preferred_element_type=jnp.float32)
        + bcls_ref[...]
    )                                                 # (1, 10)
    prob_ref[...] = jax.nn.sigmoid(logits)


def init_params(key):
    """Deterministic synthetic parameters (same shapes as the torch module)."""
    ks = jax.random.split(key, 12)

    def lin(k, fan_in, fan_out):
        bound = 1.0 / np.sqrt(fan_in)
        kw, kb = jax.random.split(k)
        w = jax.random.uniform(kw, (fan_in, fan_out), jnp.float32, -bound, bound)
        b = jax.random.uniform(kb, (1, fan_out), jnp.float32, -bound, bound)
        return w, b

    w_fc, b_fc = lin(ks[0], F_IN, L)
    w_v, b_v = lin(ks[1], L, D)
    w_u, b_u = lin(ks[2], L, D)
    w_att, b_att = lin(ks[3], D, K)
    # ten (L -> 1) classifiers stacked column-wise into a single (L, 10) matrix
    cls_w, cls_b = [], []
    for i in range(N_CLS):
        w_c, b_c = lin(ks[4 + (i % 8)], L, 1)
        cls_w.append(w_c)
        cls_b.append(b_c)
    w_cls = jnp.concatenate(cls_w, axis=1)      # (500, 10)
    b_cls = jnp.concatenate(cls_b, axis=1)      # (1, 10)
    return (w_fc, b_fc, w_v, b_v, w_u, b_u, w_att, b_att, w_cls, b_cls)


def prepare_kernel_params(params):
    """Pad L=500 -> 512, fuse V|U, cast the big weights to bf16."""
    (w_fc, b_fc, w_v, b_v, w_u, b_u, w_att, b_att, w_cls, b_cls) = params
    pad_l = LP - L
    w_fc_k = jnp.pad(w_fc, ((0, 0), (0, pad_l))).astype(jnp.bfloat16)   # (2048, 512)
    b_fc_k = jnp.pad(b_fc, ((0, 0), (0, pad_l)))                        # (1, 512)
    w_vu_k = jnp.pad(
        jnp.concatenate([w_v, w_u], axis=1), ((0, pad_l), (0, 0))
    ).astype(jnp.bfloat16)                                              # (512, 256)
    b_vu_k = jnp.concatenate([b_v, b_u], axis=1)                        # (1, 256)
    w_att_row = w_att.T                                                 # (1, 128)
    w_cls_k = jnp.pad(w_cls, ((0, pad_l), (0, 0)))                      # (512, 10)
    return (w_fc_k, b_fc_k, w_vu_k, b_vu_k, w_att_row, b_att, w_cls_k, b_cls)


def gated_attention_forward(x, kparams):
    """x: (1, N, 2048) like the torch module; returns (Y_prob, Y_hat, A)."""
    x2 = jnp.squeeze(x, axis=0)                 # (N, 2048)
    n = x2.shape[0]

    prob, attn = pl.pallas_call(
        gated_attention_kernel,
        out_shape=(
            jax.ShapeDtypeStruct((1, N_CLS), jnp.float32),
            jax.ShapeDtypeStruct((n, 1), jnp.float32),
        ),
        compiler_params=pltpu.CompilerParams(vmem_limit_bytes=16 << 20),
    )(x2, *kparams)

    y_prob = prob.T.reshape(N_CLS, 1, 1)        # matches np.array of ten (1,1) tensors
    y_hat = (y_prob.reshape(N_CLS) >= 0.5).astype(jnp.float32)
    attn_out = attn.T                           # (1, N), as the torch module returns A
    return y_prob, y_hat, attn_out


def _reference_forward(x, params):
    """Pure-JAX reference (weights rounded through bf16 like the kernel stores)."""
    (w_fc, b_fc, w_v, b_v, w_u, b_u, w_att, b_att, w_cls, b_cls) = params
    q = lambda w: w.astype(jnp.bfloat16).astype(jnp.float32)
    x2 = jnp.squeeze(x, axis=0)
    h = jnp.maximum(x2 @ q(w_fc) + b_fc, 0.0)
    a_v = jnp.tanh(h @ q(w_v) + b_v)
    a_u = jax.nn.sigmoid(h @ q(w_u) + b_u)
    a = (a_v * a_u) @ w_att + b_att
    a = jax.nn.softmax(a.T, axis=1)
    m = a @ h
    prob = jax.nn.sigmoid(m @ w_cls + b_cls)
    return prob.T.reshape(N_CLS, 1, 1), a


if __name__ == "__main__":
    key = jax.random.PRNGKey(0)
    k_param, k_x = jax.random.split(key)

    params = init_params(k_param)
    kparams = prepare_kernel_params(params)

    # bag of 8 instances, each with 2048 features (torch input is (1, N, 2048))
    x = jax.random.normal(k_x, (1, 8, F_IN), jnp.float32)

    y_prob, y_hat, attn = gated_attention_forward(x, kparams)
    jax.block_until_ready((y_prob, y_hat, attn))

    ref_prob, ref_attn = _reference_forward(x, params)
    # bf16 weight storage + bf16 MXU inputs => loosened tolerances vs f32 reference
    np.testing.assert_allclose(np.asarray(y_prob), np.asarray(ref_prob),
                               rtol=3e-2, atol=1e-2)
    np.testing.assert_allclose(np.asarray(attn), np.asarray(ref_attn),
                               rtol=3e-2, atol=1e-2)

    print("KERNEL_OK")
</pallas_src>

<mosaic_0001>
module attributes {stable_mosaic.version = 11 : i64} {
  func.func @gated_attention_kernel(%arg0: memref<8x2048xf32, #tpu.memory_space<vmem>>, %arg1: memref<2048x512xbf16, #tpu.memory_space<vmem>>, %arg2: memref<1x512xf32, #tpu.memory_space<vmem>>, %arg3: memref<512x256xbf16, #tpu.memory_space<vmem>>, %arg4: memref<1x256xf32, #tpu.memory_space<vmem>>, %arg5: memref<1x128xf32, #tpu.memory_space<vmem>>, %arg6: memref<1x1xf32, #tpu.memory_space<vmem>>, %arg7: memref<512x10xf32, #tpu.memory_space<vmem>>, %arg8: memref<1x10xf32, #tpu.memory_space<vmem>>, %arg9: memref<1x10xf32, #tpu.memory_space<vmem>>, %arg10: memref<8x1xf32, #tpu.memory_space<vmem>>) attributes {dimension_semantics = [], scalar_prefetch = 0 : i64, scratch_operands = 0 : i64, tpu.core_type = #tpu.core_type<tc>} {
    %c0 = arith.constant 0 : index
    %c0_0 = arith.constant 0 : index
    %0 = vector.load %arg0[%c0, %c0_0] : memref<8x2048xf32, #tpu.memory_space<vmem>>, vector<8x2048xf32>
    %1 = arith.truncf %0 : vector<8x2048xf32> to vector<8x2048xbf16>
    %c0_1 = arith.constant 0 : index
    %c0_2 = arith.constant 0 : index
    %2 = vector.load %arg1[%c0_1, %c0_2] : memref<2048x512xbf16, #tpu.memory_space<vmem>>, vector<2048x512xbf16>
    %cst = arith.constant dense<0.000000e+00> : vector<8x512xf32>
    %3 = tpu.matmul %1, %2, %cst {dimension_numbers = #tpu.dot_dimension_numbers<[1], [0], [0], [1], [0, 0, 1, 1], [], []>} : vector<8x2048xbf16>, vector<2048x512xbf16>, vector<8x512xf32> -> vector<8x512xf32>
    %c0_3 = arith.constant 0 : index
    %c0_4 = arith.constant 0 : index
    %4 = vector.load %arg2[%c0_3, %c0_4] : memref<1x512xf32, #tpu.memory_space<vmem>>, vector<1x512xf32>
    %5 = vector.broadcast %4 : vector<1x512xf32> to vector<8x512xf32>
    %6 = arith.addf %3, %5 : vector<8x512xf32>
    %cst_5 = arith.constant 0.000000e+00 : f32
    %7 = vector.broadcast %cst_5 : f32 to vector<8x512xf32>
    %8 = arith.maximumf %6, %7 : vector<8x512xf32>
    %9 = arith.truncf %8 : vector<8x512xf32> to vector<8x512xbf16>
    %c0_6 = arith.constant 0 : index
    %c0_7 = arith.constant 0 : index
    %10 = vector.load %arg3[%c0_6, %c0_7] : memref<512x256xbf16, #tpu.memory_space<vmem>>, vector<512x256xbf16>
    %cst_8 = arith.constant dense<0.000000e+00> : vector<8x256xf32>
    %11 = tpu.matmul %9, %10, %cst_8 {dimension_numbers = #tpu.dot_dimension_numbers<[1], [0], [0], [1], [0, 0, 1, 1], [], []>} : vector<8x512xbf16>, vector<512x256xbf16>, vector<8x256xf32> -> vector<8x256xf32>
    %c0_9 = arith.constant 0 : index
    %c0_10 = arith.constant 0 : index
    %12 = vector.load %arg4[%c0_9, %c0_10] : memref<1x256xf32, #tpu.memory_space<vmem>>, vector<1x256xf32>
    %13 = vector.broadcast %12 : vector<1x256xf32> to vector<8x256xf32>
    %14 = arith.addf %11, %13 : vector<8x256xf32>
    %15 = vector.extract_strided_slice %14 {offsets = [0, 0], sizes = [8, 128], strides = [1, 1]} : vector<8x256xf32> to vector<8x128xf32>
    %16 = math.tanh %15 : vector<8x128xf32>
    %17 = vector.extract_strided_slice %14 {offsets = [0, 128], sizes = [8, 128], strides = [1, 1]} : vector<8x256xf32> to vector<8x128xf32>
    %18 = arith.negf %17 : vector<8x128xf32>
    %19 = math.exp %18 : vector<8x128xf32>
    %cst_11 = arith.constant 1.000000e+00 : f32
    %20 = vector.broadcast %cst_11 : f32 to vector<8x128xf32>
    %21 = arith.addf %20, %19 : vector<8x128xf32>
    %22 = arith.divf %20, %21 : vector<8x128xf32>
    %23 = arith.mulf %16, %22 : vector<8x128xf32>
    %c0_12 = arith.constant 0 : index
    %c0_13 = arith.constant 0 : index
    %24 = vector.load %arg5[%c0_12, %c0_13] : memref<1x128xf32, #tpu.memory_space<vmem>>, vector<1x128xf32>
    %25 = vector.broadcast %24 : vector<1x128xf32> to vector<8x128xf32>
    %26 = arith.mulf %23, %25 : vector<8x128xf32>
    %cst_14 = arith.constant dense<0.000000e+00> : vector<8xf32>
    %27 = vector.multi_reduction <add>, %26, %cst_14 [1] : vector<8x128xf32> to vector<8xf32>
    %28 = vector.shape_cast %27 : vector<8xf32> to vector<8x1xf32>
    %c0_15 = arith.constant 0 : index
    %c0_16 = arith.constant 0 : index
    %29 = vector.load %arg6[%c0_15, %c0_16] : memref<1x1xf32, #tpu.memory_space<vmem>>, vector<1x1xf32>
    %30 = vector.broadcast %29 : vector<1x1xf32> to vector<8x1xf32>
    %31 = arith.addf %28, %30 : vector<8x1xf32>
    %cst_17 = arith.constant dense<0xFF800000> : vector<1xf32>
    %32 = vector.multi_reduction <maximumf>, %31, %cst_17 [0] : vector<8x1xf32> to vector<1xf32>
    %33 = vector.shape_cast %32 : vector<1xf32> to vector<1x1xf32>
    %34 = vector.broadcast %33 : vector<1x1xf32> to vector<8x1xf32>
    %35 = arith.subf %31, %34 : vector<8x1xf32>
    %36 = math.exp %35 : vector<8x1xf32>
    %cst_18 = arith.constant dense<0.000000e+00> : vector<1xf32>
    %37 = vector.multi_reduction <add>, %36, %cst_18 [0] : vector<8x1xf32> to vector<1xf32>
    %38 = vector.shape_cast %37 : vector<1xf32> to vector<1x1xf32>
    %39 = tpu.reciprocal %38 : vector<1x1xf32> -> vector<1x1xf32>
    %40 = vector.broadcast %39 : vector<1x1xf32> to vector<8x1xf32>
    %41 = arith.mulf %36, %40 : vector<8x1xf32>
    %c0_19 = arith.constant 0 : index
    %c0_20 = arith.constant 0 : index
    %42 = vector.load %arg10[%c0_19, %c0_20] : memref<8x1xf32, #tpu.memory_space<vmem>>, vector<8x1xf32>
    tpu.vector_store %arg10[%c0_19, %c0_20], %41 {strides = array<i32>} : memref<8x1xf32, #tpu.memory_space<vmem>>, vector<8x1xf32>,
    %43 = vector.broadcast %41 : vector<8x1xf32> to vector<8x512xf32>
    %44 = arith.mulf %43, %8 : vector<8x512xf32>
    %cst_21 = arith.constant dense<0.000000e+00> : vector<512xf32>
    %45 = vector.multi_reduction <add>, %44, %cst_21 [0] : vector<8x512xf32> to vector<512xf32>
    %46 = vector.shape_cast %45 : vector<512xf32> to vector<1x512xf32>
    %c0_22 = arith.constant 0 : index
    %c0_23 = arith.constant 0 : index
    %47 = vector.load %arg7[%c0_22, %c0_23] : memref<512x10xf32, #tpu.memory_space<vmem>>, vector<512x10xf32>
    %cst_24 = arith.constant dense<0.000000e+00> : vector<1x10xf32>
    %48 = tpu.matmul %46, %47, %cst_24 {dimension_numbers = #tpu.dot_dimension_numbers<[1], [0], [0], [1], [0, 0, 1, 1], [], []>} : vector<1x512xf32>, vector<512x10xf32>, vector<1x10xf32> -> vector<1x10xf32>
    %c0_25 = arith.constant 0 : index
    %c0_26 = arith.constant 0 : index
    %49 = vector.load %arg8[%c0_25, %c0_26] : memref<1x10xf32, #tpu.memory_space<vmem>>, vector<1x10xf32>
    %50 = arith.addf %48, %49 : vector<1x10xf32>
    %51 = arith.negf %50 : vector<1x10xf32>
    %52 = math.exp %51 : vector<1x10xf32>
    %cst_27 = arith.constant 1.000000e+00 : f32
    %53 = vector.broadcast %cst_27 : f32 to vector<1x10xf32>
    %54 = arith.addf %53, %52 : vector<1x10xf32>
    %55 = arith.divf %53, %54 : vector<1x10xf32>
    %c0_28 = arith.constant 0 : index
    %c0_29 = arith.constant 0 : index
    %56 = vector.load %arg9[%c0_28, %c0_29] : memref<1x10xf32, #tpu.memory_space<vmem>>, vector<1x10xf32>
    tpu.vector_store %arg9[%c0_28, %c0_29], %55 {strides = array<i32>} : memref<1x10xf32, #tpu.memory_space<vmem>>, vector<1x10xf32>,
    return
  }
}

</mosaic_0001>

<bundles_post_ra>
// kernel: tpu_custom_call.1
= control target key start
LH: loop header
LB: loop body
LE: loop exit
PB: predicated region body
PF: predicated region fallthrough
CT: control target
= control target key end

     0   :  { %s6842_s0 = inlined_call_operand.hbm [shape: f32[8,2048], index: 0, kind: input, shape index: {}]   ;;  %s6843_s1 = inlined_call_operand.hbm [shape: bf16[2048,512], index: 1, kind: input, shape index: {}]   ;;  %s6844_s2 = inlined_call_operand.hbm [shape: f32[1,512], index: 2, kind: input, shape index: {}]   ;;  %s6845_s3 = inlined_call_operand.hbm [shape: bf16[512,256], index: 3, kind: input, shape index: {}]   ;;  %s6846_s4 = inlined_call_operand.hbm [shape: f32[1,256], index: 4, kind: input, shape index: {}]   ;;  %s6847_s5 = inlined_call_operand.hbm [shape: f32[1,128], index: 5, kind: input, shape index: {}]   ;;  %s6848_s6 = inlined_call_operand.<no memory space> [shape: f32[1,1], index: 6, kind: input, shape index: {}]   ;;  %s6849_s7 = inlined_call_operand.vmem [shape: f32[512,10], index: 7, kind: input, shape index: {}]   ;;  %s6850_s8 = inlined_call_operand.hbm [shape: f32[1,10], index: 8, kind: input, shape index: {}]   ;;  %s6851_s9 = inlined_call_operand.hbm [shape: f32[1,10], index: 9, kind: output, shape index: {0}]   ;;  %s6852_s10 = inlined_call_operand.vmem [shape: f32[8,1], index: 10, kind: output, shape index: {1}]  }
   0x1   :  { %v16_v0 = vstv %s6848_s6 }
   0x2   :  { %17 = vst [vmem:[#allocation2] sm:$0x1] %v16_v0 }
   0x3   :  { %18 = vsyncpa [#allocation4], 0 }
   0x4   :  { %19 = vsyncpa [#allocation7], 0 }
   0x5   :  { %20 = vsyncpa [#allocation10], 0 }
   0x6   :  { %21 = vsyncpa [#allocation13], 0 }
   0x7   :  { %22 = vsyncpa [#allocation5], 0  ;;  %s6418_s15 = smov [#allocation6]  }
   0x8   :  { %s38_s16 = sshll.u32 %s6418_s15, 4  ;;  %s39_s16 = int_to_ptr.vmem [resolvable:$true] %s38_s16 }
   0x9   :  { %s6256_s17 = scalar_lea.vmem %s39_s16, 65536  ;;  %p6261_p1 = scmp.lt.s32.totalorder %s39_s16, %s39_s16 }
   0xa   :  { %p6257_p0 = scmp.ne.s32.totalorder %s39_s16, %s6256_s17  ;;  %p6262_p2 = scmp.lt.s32.totalorder %s6256_s17, %s6256_s17 }
   0xc   :  { %p6263_p3 = por %p6262_p2, %p6261_p1 }
   0xe   :  { %p6264_p4 = pnand %p6263_p3, %p6257_p0 }
  0x10   :  { %6267 = shalt.err (!%p6264_p4)
}
  0x11   :  { %s6419_s18 = smov 256   ;;  %s6420_s19 = smov 16  }
  0x12   :  { %44 = dma.hbm_to_vmem [thread:$0]  %s6843_s1, 65536, %s39_s16, [#allocation7], %s6419_s18, %s6419_s18, %s6420_s19  }
  0x13   :  { %s6421_s21 = smov [#allocation9]  }
  0x14   :  { %s60_s22 = sshll.u32 %s6421_s21, 4  ;;  %s61_s22 = int_to_ptr.vmem [resolvable:$true] %s60_s22 }
  0x15   :  { %s6276_s23 = scalar_lea.vmem %s61_s22, 8192  ;;  %p6281_p6 = scmp.lt.s32.totalorder %s61_s22, %s61_s22 }
  0x16   :  { %p6277_p5 = scmp.ne.s32.totalorder %s61_s22, %s6276_s23  ;;  %p6282_p7 = scmp.lt.s32.totalorder %s6276_s23, %s6276_s23 }
  0x18   :  { %p6283_p8 = por %p6282_p7, %p6281_p6 }
  0x1a   :  { %p6284_p9 = pnand %p6283_p8, %p6277_p5 }
  0x1c   :  { %6287 = shalt.err (!%p6284_p9)
}
  0x1d   :  { %s6422_s24 = smov 128   ;;  %s6423_s25 = smov 8  }
  0x1e   :  { %66 = dma.hbm_to_vmem [thread:$0]  %s6845_s3, 8192, %s61_s22, [#allocation10], %s6422_s24, %s6422_s24, %s6423_s25  }
  0x1f   :  { %s6424_s28 = smov [#allocation12]   ;;  %s6425_s30 = smov [#allocation3]  }
  0x20   :  { %s83_s29 = sshll.u32 %s6424_s28, 4  ;;  %s29_s1 = sshll.u32 %s6425_s30, 4  ;;  %s84_s29 = int_to_ptr.vmem [resolvable:$true] %s83_s29  ;;  %s30_s1 = int_to_ptr.vmem [resolvable:$true] %s29_s1 }
  0x21   :  { %s6296_s11 = scalar_lea.vmem %s84_s29, 16  ;;  %s6300_s12 = scalar_lea.vmem %s84_s29, 32 }
  0x22   :  { %p6297_p10 = scmp.ne.s32.totalorder %s84_s29, %s6296_s11  ;;  %p6301_p11 = scmp.lt.s32.totalorder %s84_s29, %s84_s29 }
  0x23   :  { %p6302_p12 = scmp.lt.s32.totalorder %s6300_s12, %s6296_s11 }
  0x25   :  { %p6303_p13 = por %p6302_p12, %p6301_p11 }
  0x27   :  { %p6304_p0 = pnand %p6303_p13, %p6297_p10 }
  0x29   :  { %6307 = shalt.err (!%p6304_p0)
}
  0x2a   :  { %86 = dma.hbm_to_vmem [thread:$0]  %s6847_s5, 16, %s84_s29, [#allocation13]  }
  0x2b   :  { %s6316_s15 = scalar_lea.vmem %s30_s1, 2048  ;;  %p6321_p2 = scmp.lt.s32.totalorder %s30_s1, %s30_s1 }
  0x2c   :  { %p6317_p1 = scmp.ne.s32.totalorder %s30_s1, %s6316_s15  ;;  %p6322_p3 = scmp.lt.s32.totalorder %s6316_s15, %s6316_s15 }
  0x2e   :  { %p6323_p4 = por %p6322_p3, %p6321_p2 }
  0x30   :  { %p6324_p5 = pnand %p6323_p4, %p6317_p1 }
  0x32   :  { %6327 = shalt.err (!%p6324_p5)
}
  0x33   :  { %32 = dma.hbm_to_vmem [thread:$0]  %s6842_s0, 2048, %s30_s1, [#allocation4]  }
  0x34   :  { %s6426_s17 = smov [#allocation8]   ;;  %s6427_s19 = smov [#allocation11]  }
  0x35   :  { %s51_s18 = sshll.u32 %s6426_s17, 4  ;;  %s73_s20 = sshll.u32 %s6427_s19, 4  ;;  %s52_s18 = int_to_ptr.vmem [resolvable:$true] %s51_s18  ;;  %s74_s20 = int_to_ptr.vmem [resolvable:$true] %s73_s20 }
  0x36   :  { %s6336_s6 = scalar_lea.vmem %s52_s18, 64  ;;  %p6341_p7 = scmp.lt.s32.totalorder %s52_s18, %s52_s18 }
  0x37   :  { %p6337_p6 = scmp.ne.s32.totalorder %s52_s18, %s6336_s6  ;;  %p6342_p8 = scmp.lt.s32.totalorder %s6336_s6, %s6336_s6 }
  0x39   :  { %p6343_p9 = por %p6342_p8, %p6341_p7 }
  0x3b   :  { %p6344_p10 = pnand %p6343_p9, %p6337_p6 }
  0x3d   :  { %6347 = shalt.err (!%p6344_p10)
}
  0x3e   :  { %54 = dma.hbm_to_vmem [thread:$0]  %s6844_s2, 64, %s52_s18, [#allocation7]  }
  0x3f   :  { %s6356_s22 = scalar_lea.vmem %s74_s20, 32  ;;  %p6361_p12 = scmp.lt.s32.totalorder %s74_s20, %s74_s20 }
  0x40   :  { %p6357_p11 = scmp.ne.s32.totalorder %s74_s20, %s6356_s22  ;;  %p6362_p13 = scmp.lt.s32.totalorder %s6356_s22, %s6356_s22 }
  0x42   :  { %p6363_p0 = por %p6362_p13, %p6361_p12 }
  0x44   :  { %p6364_p1 = pnand %p6363_p0, %p6357_p11 }
  0x46   :  { %6367 = shalt.err (!%p6364_p1)
}
  0x47   :  { %76 = dma.hbm_to_vmem [thread:$0]  %s6846_s4, 32, %s74_s20, [#allocation10]  }
  0x48   :  { %s6428_s24 = smov [#allocation14]  }
  0x49   :  { %s97_s25 = sshll.u32 %s6428_s24, 4  ;;  %s98_s25 = int_to_ptr.vmem [resolvable:$true] %s97_s25 }
  0x4a   :  { %s6376_s26 = scalar_lea.vmem %s98_s25, 16  ;;  %s6380_s27 = scalar_lea.vmem %s98_s25, 32 }
  0x4b   :  { %p6377_p2 = scmp.ne.s32.totalorder %s98_s25, %s6376_s26  ;;  %p6381_p3 = scmp.lt.s32.totalorder %s98_s25, %s98_s25 }
  0x4c   :  { %p6382_p4 = scmp.lt.s32.totalorder %s6380_s27, %s6376_s26 }
  0x4e   :  { %p6383_p5 = por %p6382_p4, %p6381_p3 }
  0x50   :  { %p6384_p6 = pnand %p6383_p5, %p6377_p2 }
  0x52   :  { %6387 = shalt.err (!%p6384_p6)
}
  0x53   :  { %100 = dma.hbm_to_vmem [thread:$0]  %s6850_s8, 16, %s98_s25, [#allocation13]  }
  0x54   :  { %6408 = dma.done.wait [#allocation4], 2048  }
  0x55   :  { %6409 = vsyncadd [#allocation4], 4294965248 }
  0x56   :  { %6410 = dma.done.wait [#allocation7], 65600  }
  0x57   :  { %6411 = vsyncadd [#allocation7], 4294901696 }
  0x58   :  { %6412 = dma.done.wait [#allocation10], 8224  }
  0x59   :  { %6413 = vsyncadd [#allocation10], 4294959072 }
  0x5a   :  { %6414 = dma.done.wait [#allocation13], 32  }
  0x5b   :  { %6415 = vsyncadd [#allocation13], 4294967264  ;;  %v5369_v1 = vld [vmem:[#allocation6 + $0xe4] ss:$16 sps:$4 sm:$0xff]   ;;  %v5373_v3 = vld [vmem:[#allocation6 + $0xe0] ss:$16 sps:$4 sm:$0xff]  }
  0x5c   :  { %v5371_v2 = vld [vmem:[#allocation6 + $0x2e4] ss:$16 sps:$4 sm:$0xff]   ;;  %3248 = vmatprep.subr.bf16.mxu0 %v5369_v1  ;;  %v5374_v4 = vld [vmem:[#allocation6 + $0x2e0] ss:$16 sps:$4 sm:$0xff]   ;;  %v123_v47 = vld [vmem:[#allocation3 + $0x8] sm:$0xff]  ;;  %vm4416_vm0 = vcmask 7168  }
  0x5d   :  { %3289 = vmatprep.subr.bf16.mxu1 %v5371_v2  ;;  %v5375_v5 = vld [vmem:[#allocation6 + $0xc4] ss:$16 sps:$4 sm:$0xff]   ;;  %3249 = vmatpush1.bf16.msra.mxu0 %v5373_v3  ;;  %v5379_v7 = vld [vmem:[#allocation6 + $0xc0] ss:$16 sps:$4 sm:$0xff]   ;;  %v6510_v50 = vpack.c.bf16 %v123_v47, %v123_v47  ;;  %v125_v51 = vld [vmem:[#allocation3 + $0x18] sm:$0xff]  ;;  %vm4681_vm1 = vcmask 73728  }
  0x5e   :  { %3290 = vmatpush1.bf16.msra.mxu1 %v5374_v4  ;;  %v5377_v6 = vld [vmem:[#allocation6 + $0x2c4] ss:$16 sps:$4 sm:$0xff]   ;;  %3250 = vmatprep.subr.bf16.mxu0 %v5375_v5  ;;  %v5380_v8 = vld [vmem:[#allocation6 + $0x2c0] ss:$16 sps:$4 sm:$0xff]   ;;  %v6512_v53 = vpack.c.bf16 %v125_v51, %v125_v51 }
  0x5f   :  { %3291 = vmatprep.subr.bf16.mxu1 %v5377_v6  ;;  %v5381_v9 = vld [vmem:[#allocation6 + $0xa4] ss:$16 sps:$4 sm:$0xff]   ;;  %v5385_v11 = vld [vmem:[#allocation6 + $0xa0] ss:$16 sps:$4 sm:$0xff]   ;;  %3280 = vmatprep.mubr.bf16.mxu0 %v6510_v50 }
  0x60   :  { %v5383_v10 = vld [vmem:[#allocation6 + $0x2a4] ss:$16 sps:$4 sm:$0xff]   ;;  %v5386_v12 = vld [vmem:[#allocation6 + $0x2a0] ss:$16 sps:$4 sm:$0xff]   ;;  %3321 = vmatprep.mubr.bf16.mxu1 %v6512_v53 }
  0x61   :  { %3251 = vmatpush1.bf16.msra.mxu0 %v5379_v7  ;;  %v5387_v13 = vld [vmem:[#allocation6 + $0x84] ss:$16 sps:$4 sm:$0xff]   ;;  %v5391_v15 = vld [vmem:[#allocation6 + $0x80] ss:$16 sps:$4 sm:$0xff]  }
  0x62   :  { %3292 = vmatpush1.bf16.msra.mxu1 %v5380_v8  ;;  %3252 = vmatprep.subr.bf16.mxu0 %v5381_v9  ;;  %v5389_v14 = vld [vmem:[#allocation6 + $0x284] ss:$16 sps:$4 sm:$0xff]   ;;  %v5392_v16 = vld [vmem:[#allocation6 + $0x280] ss:$16 sps:$4 sm:$0xff]  }
  0x63   :  { %3293 = vmatprep.subr.bf16.mxu1 %v5383_v10  ;;  %v5393_v17 = vld [vmem:[#allocation6 + $0x64] ss:$16 sps:$4 sm:$0xff]   ;;  %v5397_v19 = vld [vmem:[#allocation6 + $0x60] ss:$16 sps:$4 sm:$0xff]  }
  0x64   :  { %v5395_v18 = vld [vmem:[#allocation6 + $0x264] ss:$16 sps:$4 sm:$0xff]   ;;  %v5398_v20 = vld [vmem:[#allocation6 + $0x260] ss:$16 sps:$4 sm:$0xff]  }
  0x65   :  { %3253 = vmatpush1.bf16.msra.mxu0 %v5385_v11  ;;  %v5399_v21 = vld [vmem:[#allocation6 + $0x44] ss:$16 sps:$4 sm:$0xff]   ;;  %v5403_v23 = vld [vmem:[#allocation6 + $0x40] ss:$16 sps:$4 sm:$0xff]  }
  0x66   :  { %3294 = vmatpush1.bf16.msra.mxu1 %v5386_v12  ;;  %3254 = vmatprep.subr.bf16.mxu0 %v5387_v13  ;;  %v5401_v22 = vld [vmem:[#allocation6 + $0x244] ss:$16 sps:$4 sm:$0xff]   ;;  %v5404_v24 = vld [vmem:[#allocation6 + $0x240] ss:$16 sps:$4 sm:$0xff]  }
  0x67   :  { %3295 = vmatprep.subr.bf16.mxu1 %v5389_v14  ;;  %v5405_v25 = vld [vmem:[#allocation6 + $0x24] ss:$16 sps:$4 sm:$0xff]   ;;  %v5409_v27 = vld [vmem:[#allocation6 + $0x20] ss:$16 sps:$4 sm:$0xff]  }
  0x68   :  { %v5407_v26 = vld [vmem:[#allocation6 + $0x224] ss:$16 sps:$4 sm:$0xff]   ;;  %v5410_v28 = vld [vmem:[#allocation6 + $0x220] ss:$16 sps:$4 sm:$0xff]  }
  0x69   :  { %3255 = vmatpush1.bf16.msra.mxu0 %v5391_v15  ;;  %v5411_v29 = vld [vmem:[#allocation6 + $0x4] ss:$16 sps:$4 sm:$0xff]   ;;  %v5415_v31 = vld [vmem:[#allocation6] ss:$16 sps:$4 sm:$0xff]  }
  0x6a   :  { %3296 = vmatpush1.bf16.msra.mxu1 %v5392_v16  ;;  %3256 = vmatprep.subr.bf16.mxu0 %v5393_v17  ;;  %v5413_v30 = vld [vmem:[#allocation6 + $0x204] ss:$16 sps:$4 sm:$0xff]   ;;  %v5416_v32 = vld [vmem:[#allocation6 + $0x200] ss:$16 sps:$4 sm:$0xff]  }
  0x6b   :  { %3297 = vmatprep.subr.bf16.mxu1 %v5395_v18  ;;  %v5417_v33 = vld [vmem:[#allocation6 + $0x1e4] ss:$16 sps:$4 sm:$0xff]   ;;  %v5421_v35 = vld [vmem:[#allocation6 + $0x1e0] ss:$16 sps:$4 sm:$0xff]  }
  0x6c   :  { %v5419_v34 = vld [vmem:[#allocation6 + $0x3e4] ss:$16 sps:$4 sm:$0xff]   ;;  %v5422_v36 = vld [vmem:[#allocation6 + $0x3e0] ss:$16 sps:$4 sm:$0xff]  }
  0x6d   :  { %3257 = vmatpush1.bf16.msra.mxu0 %v5397_v19  ;;  %v5423_v37 = vld [vmem:[#allocation6 + $0x1c4] ss:$16 sps:$4 sm:$0xff]   ;;  %v5427_v39 = vld [vmem:[#allocation6 + $0x1c0] ss:$16 sps:$4 sm:$0xff]  }
  0x6e   :  { %3298 = vmatpush1.bf16.msra.mxu1 %v5398_v20  ;;  %3258 = vmatprep.subr.bf16.mxu0 %v5399_v21  ;;  %v5425_v38 = vld [vmem:[#allocation6 + $0x3c4] ss:$16 sps:$4 sm:$0xff]   ;;  %v5428_v40 = vld [vmem:[#allocation6 + $0x3c0] ss:$16 sps:$4 sm:$0xff]  }
  0x6f   :  { %3299 = vmatprep.subr.bf16.mxu1 %v5401_v22  ;;  %v5429_v41 = vld [vmem:[#allocation6 + $0x1a4] ss:$16 sps:$4 sm:$0xff]   ;;  %v5433_v43 = vld [vmem:[#allocation6 + $0x1a0] ss:$16 sps:$4 sm:$0xff]  }
  0x70   :  { %v5431_v42 = vld [vmem:[#allocation6 + $0x3a4] ss:$16 sps:$4 sm:$0xff]   ;;  %v5434_v44 = vld [vmem:[#allocation6 + $0x3a0] ss:$16 sps:$4 sm:$0xff]  }
  0x71   :  { %3259 = vmatpush1.bf16.msra.mxu0 %v5403_v23  ;;  %v5435_v45 = vld [vmem:[#allocation6 + $0x184] ss:$16 sps:$4 sm:$0xff]   ;;  %v5439_v48 = vld [vmem:[#allocation6 + $0x180] ss:$16 sps:$4 sm:$0xff]  }
  0x72   :  { %3300 = vmatpush1.bf16.msra.mxu1 %v5404_v24  ;;  %3260 = vmatprep.subr.bf16.mxu0 %v5405_v25  ;;  %v5437_v46 = vld [vmem:[#allocation6 + $0x384] ss:$16 sps:$4 sm:$0xff]   ;;  %v5440_v49 = vld [vmem:[#allocation6 + $0x380] ss:$16 sps:$4 sm:$0xff]  }
  0x73   :  { %3301 = vmatprep.subr.bf16.mxu1 %v5407_v26  ;;  %v5441_v52 = vld [vmem:[#allocation6 + $0x164] ss:$16 sps:$4 sm:$0xff]   ;;  %v5445_v55 = vld [vmem:[#allocation6 + $0x160] ss:$16 sps:$4 sm:$0xff]  }
  0x74   :  { %v5443_v54 = vld [vmem:[#allocation6 + $0x364] ss:$16 sps:$4 sm:$0xff]   ;;  %v5446_v56 = vld [vmem:[#allocation6 + $0x360] ss:$16 sps:$4 sm:$0xff]  }
  0x75   :  { %3261 = vmatpush1.bf16.msra.mxu0 %v5409_v27  ;;  %v5447_v57 = vld [vmem:[#allocation6 + $0x144] ss:$16 sps:$4 sm:$0xff]   ;;  %v5451_v59 = vld [vmem:[#allocation6 + $0x140] ss:$16 sps:$4 sm:$0xff]  }
  0x76   :  { %3302 = vmatpush1.bf16.msra.mxu1 %v5410_v28  ;;  %3262 = vmatprep.subr.bf16.mxu0 %v5411_v29  ;;  %v5449_v58 = vld [vmem:[#allocation6 + $0x344] ss:$16 sps:$4 sm:$0xff]   ;;  %v5452_v60 = vld [vmem:[#allocation6 + $0x340] ss:$16 sps:$4 sm:$0xff]  }
  0x77   :  { %3303 = vmatprep.subr.bf16.mxu1 %v5413_v30  ;;  %v5453_v61 = vld [vmem:[#allocation6 + $0x124] ss:$16 sps:$4 sm:$0xff]   ;;  %v5457_v63 = vld [vmem:[#allocation6 + $0x120] ss:$16 sps:$4 sm:$0xff]  }
  0x78   :  { %v5455_v62 = vld [vmem:[#allocation6 + $0x324] ss:$16 sps:$4 sm:$0xff]   ;;  %v5458_v0 = vld [vmem:[#allocation6 + $0x320] ss:$16 sps:$4 sm:$0xff]  }
  0x79   :  { %3263 = vmatpush1.bf16.msra.mxu0 %v5415_v31  ;;  %v5459_v1 = vld [vmem:[#allocation6 + $0x104] ss:$16 sps:$4 sm:$0xff]   ;;  %v5463_v3 = vld [vmem:[#allocation6 + $0x100] ss:$16 sps:$4 sm:$0xff]  }
  0x7a   :  { %3304 = vmatpush1.bf16.msra.mxu1 %v5416_v32  ;;  %3264 = vmatprep.subr.bf16.mxu0 %v5417_v33  ;;  %v5461_v2 = vld [vmem:[#allocation6 + $0x304] ss:$16 sps:$4 sm:$0xff]   ;;  %v5464_v4 = vld [vmem:[#allocation6 + $0x300] ss:$16 sps:$4 sm:$0xff]  }
  0x7b   :  { %3305 = vmatprep.subr.bf16.mxu1 %v5419_v34  ;;  %v122_v5 = vld [vmem:[#allocation3] sm:$0xff]  ;;  %v124_v6 = vld [vmem:[#allocation3 + $0x10] sm:$0xff] }
  0x7c   :  { %v5467_v7 = vld [vmem:[#allocation6 + $0x4e4] ss:$16 sps:$4 sm:$0xff]   ;;  %v6516_v9 = vpack.c.bf16 %v122_v5, %v122_v5  ;;  %v6518_v10 = vpack.c.bf16 %v124_v6, %v124_v6  ;;  %v5465_v11 = vld [vmem:[#allocation6 + $0x4e0] ss:$16 sps:$4 sm:$0xff]  }
  0x7d   :  { %3265 = vmatpush2.bf16.msra.mxu0 %v5421_v35  ;;  %v5470_v8 = vld [vmem:[#allocation6 + $0x6e4] ss:$16 sps:$4 sm:$0xff]   ;;  %v5468_v12 = vld [vmem:[#allocation6 + $0x6e0] ss:$16 sps:$4 sm:$0xff]   ;;  %v127_v35 = vld [vmem:[#allocation3 + $0x28] sm:$0xff] }
  0x7e   :  { %3306 = vmatpush2.bf16.msra.mxu1 %v5422_v36  ;;  %3266 = vmatprep.subr.bf16.mxu0 %v5423_v37  ;;  %v5473_v13 = vld [vmem:[#allocation6 + $0x4c4] ss:$16 sps:$4 sm:$0xff]   ;;  %v5471_v15 = vld [vmem:[#allocation6 + $0x4c0] ss:$16 sps:$4 sm:$0xff]  }
  0x7f   :  { %3307 = vmatprep.subr.bf16.mxu1 %v5425_v38  ;;  %v5476_v14 = vld [vmem:[#allocation6 + $0x6c4] ss:$16 sps:$4 sm:$0xff]   ;;  %v5474_v16 = vld [vmem:[#allocation6 + $0x6c0] ss:$16 sps:$4 sm:$0xff]   ;;  %v6522_v38 = vpack.c.bf16 %v127_v35, %v127_v35 }
  0x80   :  { %v5479_v17 = vld [vmem:[#allocation6 + $0x4a4] ss:$16 sps:$4 sm:$0xff]   ;;  %v5477_v19 = vld [vmem:[#allocation6 + $0x4a0] ss:$16 sps:$4 sm:$0xff]  }
  0x81   :  { %3267 = vmatpush2.bf16.msra.mxu0 %v5427_v39  ;;  %v5482_v18 = vld [vmem:[#allocation6 + $0x6a4] ss:$16 sps:$4 sm:$0xff]   ;;  %v5480_v20 = vld [vmem:[#allocation6 + $0x6a0] ss:$16 sps:$4 sm:$0xff]   ;;  %v129_v39 = vld [vmem:[#allocation3 + $0x38] sm:$0xff] }
  0x82   :  { %3308 = vmatpush2.bf16.msra.mxu1 %v5428_v40  ;;  %3268 = vmatprep.subr.bf16.mxu0 %v5429_v41  ;;  %v5485_v21 = vld [vmem:[#allocation6 + $0x484] ss:$16 sps:$4 sm:$0xff]   ;;  %v5483_v23 = vld [vmem:[#allocation6 + $0x480] ss:$16 sps:$4 sm:$0xff]   ;;  %v6524_v41 = vpack.c.bf16 %v129_v39, %v129_v39 }
  0x83   :  { %3309 = vmatprep.subr.bf16.mxu1 %v5431_v42  ;;  %v5488_v22 = vld [vmem:[#allocation6 + $0x684] ss:$16 sps:$4 sm:$0xff]   ;;  %v5486_v24 = vld [vmem:[#allocation6 + $0x680] ss:$16 sps:$4 sm:$0xff]  }
  0x84   :  { %v5491_v25 = vld [vmem:[#allocation6 + $0x464] ss:$16 sps:$4 sm:$0xff]   ;;  %v5489_v27 = vld [vmem:[#allocation6 + $0x460] ss:$16 sps:$4 sm:$0xff]  }
  0x85   :  { %3269 = vmatpush2.bf16.msra.mxu0 %v5433_v43  ;;  %v5494_v26 = vld [vmem:[#allocation6 + $0x664] ss:$16 sps:$4 sm:$0xff]   ;;  %v5492_v28 = vld [vmem:[#allocation6 + $0x660] ss:$16 sps:$4 sm:$0xff]  }
  0x86   :  { %3310 = vmatpush2.bf16.msra.mxu1 %v5434_v44  ;;  %3270 = vmatprep.subr.bf16.mxu0 %v5435_v45  ;;  %v5497_v29 = vld [vmem:[#allocation6 + $0x444] ss:$16 sps:$4 sm:$0xff]   ;;  %v5495_v31 = vld [vmem:[#allocation6 + $0x440] ss:$16 sps:$4 sm:$0xff]  }
  0x87   :  { %3311 = vmatprep.subr.bf16.mxu1 %v5437_v46  ;;  %v5500_v30 = vld [vmem:[#allocation6 + $0x644] ss:$16 sps:$4 sm:$0xff]   ;;  %v5498_v32 = vld [vmem:[#allocation6 + $0x640] ss:$16 sps:$4 sm:$0xff]  }
  0x88   :  { %v5503_v33 = vld [vmem:[#allocation6 + $0x424] ss:$16 sps:$4 sm:$0xff]   ;;  %v5501_v36 = vld [vmem:[#allocation6 + $0x420] ss:$16 sps:$4 sm:$0xff]  }
  0x89   :  { %3271 = vmatpush2.bf16.msra.mxu0 %v5439_v48  ;;  %v5506_v34 = vld [vmem:[#allocation6 + $0x624] ss:$16 sps:$4 sm:$0xff]   ;;  %v5504_v37 = vld [vmem:[#allocation6 + $0x620] ss:$16 sps:$4 sm:$0xff]  }
  0x8a   :  { %3312 = vmatpush2.bf16.msra.mxu1 %v5440_v49  ;;  %3272 = vmatprep.subr.bf16.mxu0 %v5441_v52  ;;  %v5509_v40 = vld [vmem:[#allocation6 + $0x404] ss:$16 sps:$4 sm:$0xff]   ;;  %v5507_v43 = vld [vmem:[#allocation6 + $0x400] ss:$16 sps:$4 sm:$0xff]  }
  0x8b   :  { %3313 = vmatprep.subr.bf16.mxu1 %v5443_v54  ;;  %v5512_v42 = vld [vmem:[#allocation6 + $0x604] ss:$16 sps:$4 sm:$0xff]   ;;  %v5510_v44 = vld [vmem:[#allocation6 + $0x600] ss:$16 sps:$4 sm:$0xff]  }
  0x8c   :  { %v5515_v45 = vld [vmem:[#allocation6 + $0x5e4] ss:$16 sps:$4 sm:$0xff]   ;;  %v5513_v47 = vld [vmem:[#allocation6 + $0x5e0] ss:$16 sps:$4 sm:$0xff]  }
  0x8d   :  { %3273 = vmatpush2.bf16.msra.mxu0 %v5445_v55  ;;  %v5518_v46 = vld [vmem:[#allocation6 + $0x7e4] ss:$16 sps:$4 sm:$0xff]   ;;  %v5516_v48 = vld [vmem:[#allocation6 + $0x7e0] ss:$16 sps:$4 sm:$0xff]  }
  0x8e   :  { %3314 = vmatpush2.bf16.msra.mxu1 %v5446_v56  ;;  %3274 = vmatprep.subr.bf16.mxu0 %v5447_v57  ;;  %v5521_v49 = vld [vmem:[#allocation6 + $0x5c4] ss:$16 sps:$4 sm:$0xff]   ;;  %v5519_v52 = vld [vmem:[#allocation6 + $0x5c0] ss:$16 sps:$4 sm:$0xff]  }
  0x8f   :  { %3315 = vmatprep.subr.bf16.mxu1 %v5449_v58  ;;  %v5524_v51 = vld [vmem:[#allocation6 + $0x7c4] ss:$16 sps:$4 sm:$0xff]   ;;  %v5522_v54 = vld [vmem:[#allocation6 + $0x7c0] ss:$16 sps:$4 sm:$0xff]  }
  0x90   :  { %v5527_v55 = vld [vmem:[#allocation6 + $0x5a4] ss:$16 sps:$4 sm:$0xff]   ;;  %v5525_v57 = vld [vmem:[#allocation6 + $0x5a0] ss:$16 sps:$4 sm:$0xff]  }
  0x91   :  { %3275 = vmatpush2.bf16.msra.mxu0 %v5451_v59  ;;  %v5530_v56 = vld [vmem:[#allocation6 + $0x7a4] ss:$16 sps:$4 sm:$0xff]   ;;  %v5528_v58 = vld [vmem:[#allocation6 + $0x7a0] ss:$16 sps:$4 sm:$0xff]  }
  0x92   :  { %3316 = vmatpush2.bf16.msra.mxu1 %v5452_v60  ;;  %3276 = vmatprep.subr.bf16.mxu0 %v5453_v61  ;;  %v5533_v59 = vld [vmem:[#allocation6 + $0x584] ss:$16 sps:$4 sm:$0xff]   ;;  %v5531_v61 = vld [vmem:[#allocation6 + $0x580] ss:$16 sps:$4 sm:$0xff]  }
  0x93   :  { %3317 = vmatprep.subr.bf16.mxu1 %v5455_v62  ;;  %v5536_v60 = vld [vmem:[#allocation6 + $0x784] ss:$16 sps:$4 sm:$0xff]   ;;  %v5534_v62 = vld [vmem:[#allocation6 + $0x780] ss:$16 sps:$4 sm:$0xff]  }
  0x94   :  { %v5543_v5 = vld [vmem:[#allocation6 + $0x540] ss:$16 sps:$4 sm:$0xff]   ;;  %v5584_v39 = vld [vmem:[#allocation6 + $0xa84] ss:$16 sps:$4 sm:$0xff]  }
  0x95   :  { %3277 = vmatpush2.bf16.msra.mxu0 %v5457_v63  ;;  %v5539_v63 = vld [vmem:[#allocation6 + $0x564] ss:$16 sps:$4 sm:$0xff]   ;;  %v5546_v6 = vld [vmem:[#allocation6 + $0x740] ss:$16 sps:$4 sm:$0xff]  }
  0x96   :  { %3318 = vmatpush2.bf16.msra.mxu1 %v5458_v0  ;;  %3278 = vmatprep.subr.bf16.mxu0 %v5459_v1  ;;  %v5542_v0 = vld [vmem:[#allocation6 + $0x764] ss:$16 sps:$4 sm:$0xff]   ;;  %v5537_v1 = vld [vmem:[#allocation6 + $0x560] ss:$16 sps:$4 sm:$0xff]  }
  0x97   :  { %3319 = vmatprep.subr.bf16.mxu1 %v5461_v2  ;;  %v5540_v2 = vld [vmem:[#allocation6 + $0x760] ss:$16 sps:$4 sm:$0xff]  }
  0x98   :  { %v5573_v35 = vld [vmem:[#allocation6 + $0x8a0] ss:$16 sps:$4 sm:$0xff]  }
  0x99   :  { %3279 = vmatpush2.bf16.msra.mxu0 %v5463_v3  ;;  %v5545_v3 = vld [vmem:[#allocation6 + $0x544] ss:$16 sps:$4 sm:$0xff]  }
  0x9a   :  { %3320 = vmatpush2.bf16.msra.mxu1 %v5464_v4  ;;  %3330 = vmatprep.subr.bf16.mxu0 %v5467_v7  ;;  %v5548_v4 = vld [vmem:[#allocation6 + $0x744] ss:$16 sps:$4 sm:$0xff]  }
  0x9b   :  { %3371 = vmatprep.subr.bf16.mxu1 %v5470_v8  ;;  %v5551_v7 = vld [vmem:[#allocation6 + $0x524] ss:$16 sps:$4 sm:$0xff]  }
  0x9c   :  { %3281 = vmatmul.mubr.bf16.vlgmr.msra.gmra.mxu0 %v6516_v9  ;;  %v5554_v8 = vld [vmem:[#allocation6 + $0x724] ss:$16 sps:$4 sm:$0xff]  }
  0x9d   :  { %3322 = vmatmul.mubr.bf16.vlgmr.msra.gmra.mxu1 %v6518_v10  ;;  %3331 = vmatpush1.bf16.msra.mxu0 %v5465_v11  ;;  %v5549_v11 = vld [vmem:[#allocation6 + $0x520] ss:$16 sps:$4 sm:$0xff]  }
  0x9e   :  { %3372 = vmatpush1.bf16.msra.mxu1 %v5468_v12  ;;  %3332 = vmatprep.subr.bf16.mxu0 %v5473_v13  ;;  %v5552_v12 = vld [vmem:[#allocation6 + $0x720] ss:$16 sps:$4 sm:$0xff]   ;;  %v5557_v13 = vld [vmem:[#allocation6 + $0x504] ss:$16 sps:$4 sm:$0xff]  }
  0x9f   :  { %3373 = vmatprep.subr.bf16.mxu1 %v5476_v14  ;;  %3362 = vmatprep.mubr.bf16.mxu0 %v6522_v38  ;;  %v5560_v14 = vld [vmem:[#allocation6 + $0x704] ss:$16 sps:$4 sm:$0xff]  }
  0xa0   :  { %3403 = vmatprep.mubr.bf16.mxu1 %v6524_v41 }
  0xa1   :  { %3333 = vmatpush1.bf16.msra.mxu0 %v5471_v15  ;;  %v5555_v15 = vld [vmem:[#allocation6 + $0x500] ss:$16 sps:$4 sm:$0xff]  }
  0xa2   :  { %3374 = vmatpush1.bf16.msra.mxu1 %v5474_v16  ;;  %3334 = vmatprep.subr.bf16.mxu0 %v5479_v17  ;;  %v5558_v16 = vld [vmem:[#allocation6 + $0x700] ss:$16 sps:$4 sm:$0xff]  }
  0xa3   :  { %3375 = vmatprep.subr.bf16.mxu1 %v5482_v18  ;;  %v126_v17 = vld [vmem:[#allocation3 + $0x20] sm:$0xff]  ;;  %v128_v18 = vld [vmem:[#allocation3 + $0x30] sm:$0xff] }
  0xa5   :  { %3335 = vmatpush1.bf16.msra.mxu0 %v5477_v19  ;;  %v5563_v19 = vld [vmem:[#allocation6 + $0x8e4] ss:$16 sps:$4 sm:$0xff]  }
  0xa6   :  { %3376 = vmatpush1.bf16.msra.mxu1 %v5480_v20  ;;  %3336 = vmatprep.subr.bf16.mxu0 %v5485_v21  ;;  %v5566_v20 = vld [vmem:[#allocation6 + $0xae4] ss:$16 sps:$4 sm:$0xff]   ;;  %v6528_v21 = vpack.c.bf16 %v126_v17, %v126_v17  ;;  %v5633_v17 = vld [vmem:[#allocation6 + $0x960] ss:$16 sps:$4 sm:$0xff]  }
  0xa7   :  { %3377 = vmatprep.subr.bf16.mxu1 %v5488_v22  ;;  %v6530_v22 = vpack.c.bf16 %v128_v18, %v128_v18  ;;  %v5636_v18 = vld [vmem:[#allocation6 + $0xb60] ss:$16 sps:$4 sm:$0xff]  }
  0xa9   :  { %3337 = vmatpush1.bf16.msra.mxu0 %v5483_v23  ;;  %v5561_v23 = vld [vmem:[#allocation6 + $0x8e0] ss:$16 sps:$4 sm:$0xff]  }
  0xaa   :  { %3378 = vmatpush1.bf16.msra.mxu1 %v5486_v24  ;;  %3338 = vmatprep.subr.bf16.mxu0 %v5491_v25  ;;  %v5564_v24 = vld [vmem:[#allocation6 + $0xae0] ss:$16 sps:$4 sm:$0xff]   ;;  %v5569_v25 = vld [vmem:[#allocation6 + $0x8c4] ss:$16 sps:$4 sm:$0xff]  }
  0xab   :  { %3379 = vmatprep.subr.bf16.mxu1 %v5494_v26  ;;  %v5572_v26 = vld [vmem:[#allocation6 + $0xac4] ss:$16 sps:$4 sm:$0xff]  }
  0xad   :  { %3339 = vmatpush1.bf16.msra.mxu0 %v5489_v27  ;;  %v131_v27 = vld [vmem:[#allocation3 + $0x48] sm:$0xff] }
  0xae   :  { %3380 = vmatpush1.bf16.msra.mxu1 %v5492_v28  ;;  %3340 = vmatprep.subr.bf16.mxu0 %v5497_v29  ;;  %v5567_v28 = vld [vmem:[#allocation6 + $0x8c0] ss:$16 sps:$4 sm:$0xff]  }
  0xaf   :  { %3381 = vmatprep.subr.bf16.mxu1 %v5500_v30  ;;  %v5570_v29 = vld [vmem:[#allocation6 + $0xac0] ss:$16 sps:$4 sm:$0xff]   ;;  %v6534_v30 = vpack.c.bf16 %v131_v27, %v131_v27 }
  0xb0   :  { %v5645_v27 = vld [vmem:[#allocation6 + $0x920] ss:$16 sps:$4 sm:$0xff]  }
  0xb1   :  { %3341 = vmatpush1.bf16.msra.mxu0 %v5495_v31  ;;  %v133_v31 = vld [vmem:[#allocation3 + $0x58] sm:$0xff] }
  0xb2   :  { %3382 = vmatpush1.bf16.msra.mxu1 %v5498_v32  ;;  %3342 = vmatprep.subr.bf16.mxu0 %v5503_v33  ;;  %v5575_v32 = vld [vmem:[#allocation6 + $0x8a4] ss:$16 sps:$4 sm:$0xff]   ;;  %v6536_v33 = vpack.c.bf16 %v133_v31, %v133_v31 }
  0xb3   :  { %3383 = vmatprep.subr.bf16.mxu1 %v5506_v34  ;;  %v5578_v34 = vld [vmem:[#allocation6 + $0xaa4] ss:$16 sps:$4 sm:$0xff]  }
  0xb4   :  { %v5656_v31 = vld [vmem:[#allocation6 + $0xb04] ss:$16 sps:$4 sm:$0xff]  }
  0xb5   :  { %3343 = vmatpush1.bf16.msra.mxu0 %v5501_v36  ;;  %v5576_v36 = vld [vmem:[#allocation6 + $0xaa0] ss:$16 sps:$4 sm:$0xff]  }
  0xb6   :  { %3384 = vmatpush1.bf16.msra.mxu1 %v5504_v37  ;;  %3344 = vmatprep.subr.bf16.mxu0 %v5509_v40  ;;  %v5581_v37 = vld [vmem:[#allocation6 + $0x884] ss:$16 sps:$4 sm:$0xff]   ;;  %v5579_v40 = vld [vmem:[#allocation6 + $0x880] ss:$16 sps:$4 sm:$0xff]  }
  0xb7   :  { %3385 = vmatprep.subr.bf16.mxu1 %v5512_v42  ;;  %v5582_v42 = vld [vmem:[#allocation6 + $0xa80] ss:$16 sps:$4 sm:$0xff]  }
  0xb9   :  { %3345 = vmatpush1.bf16.msra.mxu0 %v5507_v43  ;;  %v5587_v43 = vld [vmem:[#allocation6 + $0x864] ss:$16 sps:$4 sm:$0xff]  }
  0xba   :  { %3386 = vmatpush1.bf16.msra.mxu1 %v5510_v44  ;;  %3346 = vmatprep.subr.bf16.mxu0 %v5515_v45  ;;  %v5590_v44 = vld [vmem:[#allocation6 + $0xa64] ss:$16 sps:$4 sm:$0xff]   ;;  %v5585_v45 = vld [vmem:[#allocation6 + $0x860] ss:$16 sps:$4 sm:$0xff]  }
  0xbb   :  { %3387 = vmatprep.subr.bf16.mxu1 %v5518_v46  ;;  %v5588_v46 = vld [vmem:[#allocation6 + $0xa60] ss:$16 sps:$4 sm:$0xff]  }
  0xbd   :  { %3347 = vmatpush2.bf16.msra.mxu0 %v5513_v47  ;;  %v5593_v47 = vld [vmem:[#allocation6 + $0x844] ss:$16 sps:$4 sm:$0xff]  }
  0xbe   :  { %3388 = vmatpush2.bf16.msra.mxu1 %v5516_v48  ;;  %3348 = vmatprep.subr.bf16.mxu0 %v5521_v49  ;;  %v5596_v48 = vld [vmem:[#allocation6 + $0xa44] ss:$16 sps:$4 sm:$0xff]   ;;  %v5591_v49 = vld [vmem:[#allocation6 + $0x840] ss:$16 sps:$4 sm:$0xff]  }
  0xbf   :  { %3389 = vmatprep.subr.bf16.mxu1 %v5524_v51  ;;  %v5594_v51 = vld [vmem:[#allocation6 + $0xa40] ss:$16 sps:$4 sm:$0xff]  }
  0xc1   :  { %3349 = vmatpush2.bf16.msra.mxu0 %v5519_v52  ;;  %v5599_v52 = vld [vmem:[#allocation6 + $0x824] ss:$16 sps:$4 sm:$0xff]  }
  0xc2   :  { %3390 = vmatpush2.bf16.msra.mxu1 %v5522_v54  ;;  %3350 = vmatprep.subr.bf16.mxu0 %v5527_v55  ;;  %v5602_v54 = vld [vmem:[#allocation6 + $0xa24] ss:$16 sps:$4 sm:$0xff]   ;;  %v5597_v55 = vld [vmem:[#allocation6 + $0x820] ss:$16 sps:$4 sm:$0xff]  }
  0xc3   :  { %3391 = vmatprep.subr.bf16.mxu1 %v5530_v56  ;;  %v5600_v56 = vld [vmem:[#allocation6 + $0xa20] ss:$16 sps:$4 sm:$0xff]  }
  0xc5   :  { %3351 = vmatpush2.bf16.msra.mxu0 %v5525_v57  ;;  %v5605_v57 = vld [vmem:[#allocation6 + $0x804] ss:$16 sps:$4 sm:$0xff]  }
  0xc6   :  { %3392 = vmatpush2.bf16.msra.mxu1 %v5528_v58  ;;  %3352 = vmatprep.subr.bf16.mxu0 %v5533_v59  ;;  %v5608_v58 = vld [vmem:[#allocation6 + $0xa04] ss:$16 sps:$4 sm:$0xff]   ;;  %v5603_v59 = vld [vmem:[#allocation6 + $0x800] ss:$16 sps:$4 sm:$0xff]  }
  0xc7   :  { %3393 = vmatprep.subr.bf16.mxu1 %v5536_v60  ;;  %v5606_v60 = vld [vmem:[#allocation6 + $0xa00] ss:$16 sps:$4 sm:$0xff]  }
  0xc9   :  { %3353 = vmatpush2.bf16.msra.mxu0 %v5531_v61  ;;  %v5611_v61 = vld [vmem:[#allocation6 + $0x9e4] ss:$16 sps:$4 sm:$0xff]  }
  0xca   :  { %3394 = vmatpush2.bf16.msra.mxu1 %v5534_v62  ;;  %3354 = vmatprep.subr.bf16.mxu0 %v5539_v63  ;;  %v5614_v62 = vld [vmem:[#allocation6 + $0xbe4] ss:$16 sps:$4 sm:$0xff]   ;;  %v5609_v63 = vld [vmem:[#allocation6 + $0x9e0] ss:$16 sps:$4 sm:$0xff]  }
  0xcb   :  { %3395 = vmatprep.subr.bf16.mxu1 %v5542_v0  ;;  %v5612_v0 = vld [vmem:[#allocation6 + $0xbe0] ss:$16 sps:$4 sm:$0xff]  }
  0xcd   :  { %3355 = vmatpush2.bf16.msra.mxu0 %v5537_v1  ;;  %v5617_v1 = vld [vmem:[#allocation6 + $0x9c4] ss:$16 sps:$4 sm:$0xff]  }
  0xce   :  { %3396 = vmatpush2.bf16.msra.mxu1 %v5540_v2  ;;  %3356 = vmatprep.subr.bf16.mxu0 %v5545_v3  ;;  %v5620_v2 = vld [vmem:[#allocation6 + $0xbc4] ss:$16 sps:$4 sm:$0xff]   ;;  %v5615_v3 = vld [vmem:[#allocation6 + $0x9c0] ss:$16 sps:$4 sm:$0xff]  }
  0xcf   :  { %3397 = vmatprep.subr.bf16.mxu1 %v5548_v4  ;;  %v5618_v4 = vld [vmem:[#allocation6 + $0xbc0] ss:$16 sps:$4 sm:$0xff]  }
  0xd1   :  { %3357 = vmatpush2.bf16.msra.mxu0 %v5543_v5  ;;  %v5623_v5 = vld [vmem:[#allocation6 + $0x9a4] ss:$16 sps:$4 sm:$0xff]  }
  0xd2   :  { %3398 = vmatpush2.bf16.msra.mxu1 %v5546_v6  ;;  %3358 = vmatprep.subr.bf16.mxu0 %v5551_v7  ;;  %v5626_v6 = vld [vmem:[#allocation6 + $0xba4] ss:$16 sps:$4 sm:$0xff]   ;;  %v5621_v7 = vld [vmem:[#allocation6 + $0x9a0] ss:$16 sps:$4 sm:$0xff]  }
  0xd3   :  { %3399 = vmatprep.subr.bf16.mxu1 %v5554_v8  ;;  %v5624_v8 = vld [vmem:[#allocation6 + $0xba0] ss:$16 sps:$4 sm:$0xff]  }
  0xd5   :  { %3359 = vmatpush2.bf16.msra.mxu0 %v5549_v11  ;;  %v5629_v11 = vld [vmem:[#allocation6 + $0x984] ss:$16 sps:$4 sm:$0xff]  }
  0xd6   :  { %3400 = vmatpush2.bf16.msra.mxu1 %v5552_v12  ;;  %3360 = vmatprep.subr.bf16.mxu0 %v5557_v13  ;;  %v5632_v12 = vld [vmem:[#allocation6 + $0xb84] ss:$16 sps:$4 sm:$0xff]   ;;  %v5627_v13 = vld [vmem:[#allocation6 + $0x980] ss:$16 sps:$4 sm:$0xff]  }
  0xd7   :  { %3401 = vmatprep.subr.bf16.mxu1 %v5560_v14  ;;  %v5630_v14 = vld [vmem:[#allocation6 + $0xb80] ss:$16 sps:$4 sm:$0xff]  }
  0xd9   :  { %3361 = vmatpush2.bf16.msra.mxu0 %v5555_v15  ;;  %v5635_v15 = vld [vmem:[#allocation6 + $0x964] ss:$16 sps:$4 sm:$0xff]  }
  0xda   :  { %3402 = vmatpush2.bf16.msra.mxu1 %v5558_v16  ;;  %3412 = vmatprep.subr.bf16.mxu0 %v5563_v19  ;;  %v5638_v16 = vld [vmem:[#allocation6 + $0xb64] ss:$16 sps:$4 sm:$0xff]  }
  0xdb   :  { %3453 = vmatprep.subr.bf16.mxu1 %v5566_v20  ;;  %v5641_v19 = vld [vmem:[#allocation6 + $0x944] ss:$16 sps:$4 sm:$0xff]  }
  0xdc   :  { %3363 = vmatmul.mubr.bf16.vlgmr.msra.gmra.mxu0 %v6528_v21  ;;  %v5644_v20 = vld [vmem:[#allocation6 + $0xb44] ss:$16 sps:$4 sm:$0xff]  }
  0xdd   :  { %3404 = vmatmul.mubr.bf16.vlgmr.msra.gmra.mxu1 %v6530_v22  ;;  %3413 = vmatpush1.bf16.msra.mxu0 %v5561_v23  ;;  %v5639_v23 = vld [vmem:[#allocation6 + $0x940] ss:$16 sps:$4 sm:$0xff]  }
  0xde   :  { %3454 = vmatpush1.bf16.msra.mxu1 %v5564_v24  ;;  %3414 = vmatprep.subr.bf16.mxu0 %v5569_v25  ;;  %v5642_v24 = vld [vmem:[#allocation6 + $0xb40] ss:$16 sps:$4 sm:$0xff]   ;;  %v5647_v25 = vld [vmem:[#allocation6 + $0x924] ss:$16 sps:$4 sm:$0xff]  }
  0xdf   :  { %3455 = vmatprep.subr.bf16.mxu1 %v5572_v26  ;;  %3444 = vmatprep.mubr.bf16.mxu0 %v6534_v30  ;;  %v5650_v26 = vld [vmem:[#allocation6 + $0xb24] ss:$16 sps:$4 sm:$0xff]  }
  0xe0   :  { %3485 = vmatprep.mubr.bf16.mxu1 %v6536_v33 }
  0xe1   :  { %3415 = vmatpush1.bf16.msra.mxu0 %v5567_v28  ;;  %v5648_v28 = vld [vmem:[#allocation6 + $0xb20] ss:$16 sps:$4 sm:$0xff]  }
  0xe2   :  { %3456 = vmatpush1.bf16.msra.mxu1 %v5570_v29  ;;  %3416 = vmatprep.subr.bf16.mxu0 %v5575_v32  ;;  %v5653_v29 = vld [vmem:[#allocation6 + $0x904] ss:$16 sps:$4 sm:$0xff]   ;;  %v5651_v32 = vld [vmem:[#allocation6 + $0x900] ss:$16 sps:$4 sm:$0xff]  }
  0xe3   :  { %3457 = vmatprep.subr.bf16.mxu1 %v5578_v34  ;;  %v5654_v34 = vld [vmem:[#allocation6 + $0xb00] ss:$16 sps:$4 sm:$0xff]  }
  0xe5   :  { %3417 = vmatpush1.bf16.msra.mxu0 %v5573_v35  ;;  %v130_v35 = vld [vmem:[#allocation3 + $0x40] sm:$0xff] }
  0xe6   :  { %3458 = vmatpush1.bf16.msra.mxu1 %v5576_v36  ;;  %3418 = vmatprep.subr.bf16.mxu0 %v5581_v37  ;;  %v132_v36 = vld [vmem:[#allocation3 + $0x50] sm:$0xff] }
  0xe7   :  { %3459 = vmatprep.subr.bf16.mxu1 %v5584_v39  ;;  %v5659_v37 = vld [vmem:[#allocation6 + $0xce4] ss:$16 sps:$4 sm:$0xff]  }
  0xe8   :  { %v5662_v39 = vld [vmem:[#allocation6 + $0xee4] ss:$16 sps:$4 sm:$0xff]  }
  0xe9   :  { %3419 = vmatpush1.bf16.msra.mxu0 %v5579_v40  ;;  %v5657_v40 = vld [vmem:[#allocation6 + $0xce0] ss:$16 sps:$4 sm:$0xff]  }
  0xea   :  { %3460 = vmatpush1.bf16.msra.mxu1 %v5582_v42  ;;  %3420 = vmatprep.subr.bf16.mxu0 %v5587_v43  ;;  %v135_v42 = vld [vmem:[#allocation3 + $0x68] sm:$0xff]  ;;  %v6540_v43 = vpack.c.bf16 %v130_v35, %v130_v35  ;;  %v5723_v35 = vld [vmem:[#allocation6 + $0xd80] ss:$16 sps:$4 sm:$0xff]  }
  0xeb   :  { %3461 = vmatprep.subr.bf16.mxu1 %v5590_v44  ;;  %v6542_v44 = vpack.c.bf16 %v132_v36, %v132_v36  ;;  %v5726_v36 = vld [vmem:[#allocation6 + $0xf80] ss:$16 sps:$4 sm:$0xff]  }
  0xed   :  { %3421 = vmatpush1.bf16.msra.mxu0 %v5585_v45  ;;  %v137_v45 = vld [vmem:[#allocation3 + $0x78] sm:$0xff] }
  0xee   :  { %3462 = vmatpush1.bf16.msra.mxu1 %v5588_v46  ;;  %3422 = vmatprep.subr.bf16.mxu0 %v5593_v47  ;;  %v5660_v46 = vld [vmem:[#allocation6 + $0xee0] ss:$16 sps:$4 sm:$0xff]   ;;  %v5665_v47 = vld [vmem:[#allocation6 + $0xcc4] ss:$16 sps:$4 sm:$0xff]  }
  0xef   :  { %3463 = vmatprep.subr.bf16.mxu1 %v5596_v48  ;;  %v5668_v48 = vld [vmem:[#allocation6 + $0xec4] ss:$16 sps:$4 sm:$0xff]  }
  0xf1   :  { %3423 = vmatpush1.bf16.msra.mxu0 %v5591_v49  ;;  %v6544_v49 = vpack.c.bf16 %v135_v42, %v135_v42  ;;  %v5732_v42 = vld [vmem:[#allocation6 + $0xf60] ss:$16 sps:$4 sm:$0xff]  }
  0xf2   :  { %3464 = vmatpush1.bf16.msra.mxu1 %v5594_v51  ;;  %3424 = vmatprep.subr.bf16.mxu0 %v5599_v52  ;;  %v6546_v51 = vpack.c.bf16 %v137_v45, %v137_v45  ;;  %v5663_v52 = vld [vmem:[#allocation6 + $0xcc0] ss:$16 sps:$4 sm:$0xff]   ;;  %v5737_v45 = vld [vmem:[#allocation6 + $0xd44] ss:$16 sps:$4 sm:$0xff]  }
  0xf3   :  { %3465 = vmatprep.subr.bf16.mxu1 %v5602_v54  ;;  %v5666_v54 = vld [vmem:[#allocation6 + $0xec0] ss:$16 sps:$4 sm:$0xff]  }
  0xf5   :  { %3425 = vmatpush1.bf16.msra.mxu0 %v5597_v55  ;;  %v5671_v55 = vld [vmem:[#allocation6 + $0xca4] ss:$16 sps:$4 sm:$0xff]  }
  0xf6   :  { %3466 = vmatpush1.bf16.msra.mxu1 %v5600_v56  ;;  %3426 = vmatprep.subr.bf16.mxu0 %v5605_v57  ;;  %v5674_v56 = vld [vmem:[#allocation6 + $0xea4] ss:$16 sps:$4 sm:$0xff]   ;;  %v5669_v57 = vld [vmem:[#allocation6 + $0xca0] ss:$16 sps:$4 sm:$0xff]  }
  0xf7   :  { %3467 = vmatprep.subr.bf16.mxu1 %v5608_v58  ;;  %v5672_v58 = vld [vmem:[#allocation6 + $0xea0] ss:$16 sps:$4 sm:$0xff]  }
  0xf9   :  { %3427 = vmatpush1.bf16.msra.mxu0 %v5603_v59  ;;  %v5677_v59 = vld [vmem:[#allocation6 + $0xc84] ss:$16 sps:$4 sm:$0xff]  }
  0xfa   :  { %3468 = vmatpush1.bf16.msra.mxu1 %v5606_v60  ;;  %3428 = vmatprep.subr.bf16.mxu0 %v5611_v61  ;;  %v5680_v60 = vld [vmem:[#allocation6 + $0xe84] ss:$16 sps:$4 sm:$0xff]   ;;  %v5675_v61 = vld [vmem:[#allocation6 + $0xc80] ss:$16 sps:$4 sm:$0xff]  }
  0xfb   :  { %3469 = vmatprep.subr.bf16.mxu1 %v5614_v62  ;;  %v5678_v62 = vld [vmem:[#allocation6 + $0xe80] ss:$16 sps:$4 sm:$0xff]  }
  0xfd   :  { %3429 = vmatpush2.bf16.msra.mxu0 %v5609_v63  ;;  %v5683_v63 = vld [vmem:[#allocation6 + $0xc64] ss:$16 sps:$4 sm:$0xff]  }
  0xfe   :  { %3470 = vmatpush2.bf16.msra.mxu1 %v5612_v0  ;;  %3430 = vmatprep.subr.bf16.mxu0 %v5617_v1  ;;  %v5686_v0 = vld [vmem:[#allocation6 + $0xe64] ss:$16 sps:$4 sm:$0xff]   ;;  %v5681_v1 = vld [vmem:[#allocation6 + $0xc60] ss:$16 sps:$4 sm:$0xff]  }
  0xff   :  { %3471 = vmatprep.subr.bf16.mxu1 %v5620_v2  ;;  %v5684_v2 = vld [vmem:[#allocation6 + $0xe60] ss:$16 sps:$4 sm:$0xff]  }
 0x101   :  { %3431 = vmatpush2.bf16.msra.mxu0 %v5615_v3  ;;  %v5689_v3 = vld [vmem:[#allocation6 + $0xc44] ss:$16 sps:$4 sm:$0xff]  }
 0x102   :  { %3472 = vmatpush2.bf16.msra.mxu1 %v5618_v4  ;;  %3432 = vmatprep.subr.bf16.mxu0 %v5623_v5  ;;  %v5692_v4 = vld [vmem:[#allocation6 + $0xe44] ss:$16 sps:$4 sm:$0xff]   ;;  %v5687_v5 = vld [vmem:[#allocation6 + $0xc40] ss:$16 sps:$4 sm:$0xff]  }
 0x103   :  { %3473 = vmatprep.subr.bf16.mxu1 %v5626_v6  ;;  %v5690_v6 = vld [vmem:[#allocation6 + $0xe40] ss:$16 sps:$4 sm:$0xff]  }
 0x105   :  { %3433 = vmatpush2.bf16.msra.mxu0 %v5621_v7  ;;  %v5695_v7 = vld [vmem:[#allocation6 + $0xc24] ss:$16 sps:$4 sm:$0xff]  }
 0x106   :  { %3474 = vmatpush2.bf16.msra.mxu1 %v5624_v8  ;;  %3434 = vmatprep.subr.bf16.mxu0 %v5629_v11  ;;  %v5698_v8 = vld [vmem:[#allocation6 + $0xe24] ss:$16 sps:$4 sm:$0xff]   ;;  %v5693_v11 = vld [vmem:[#allocation6 + $0xc20] ss:$16 sps:$4 sm:$0xff]  }
 0x107   :  { %3475 = vmatprep.subr.bf16.mxu1 %v5632_v12  ;;  %v5696_v12 = vld [vmem:[#allocation6 + $0xe20] ss:$16 sps:$4 sm:$0xff]  }
 0x109   :  { %3435 = vmatpush2.bf16.msra.mxu0 %v5627_v13  ;;  %v5701_v13 = vld [vmem:[#allocation6 + $0xc04] ss:$16 sps:$4 sm:$0xff]  }
 0x10a   :  { %3476 = vmatpush2.bf16.msra.mxu1 %v5630_v14  ;;  %3436 = vmatprep.subr.bf16.mxu0 %v5635_v15  ;;  %v5704_v14 = vld [vmem:[#allocation6 + $0xe04] ss:$16 sps:$4 sm:$0xff]   ;;  %v5699_v15 = vld [vmem:[#allocation6 + $0xc00] ss:$16 sps:$4 sm:$0xff]  }
 0x10b   :  { %3477 = vmatprep.subr.bf16.mxu1 %v5638_v16  ;;  %v5702_v16 = vld [vmem:[#allocation6 + $0xe00] ss:$16 sps:$4 sm:$0xff]  }
 0x10d   :  { %3437 = vmatpush2.bf16.msra.mxu0 %v5633_v17  ;;  %v5707_v17 = vld [vmem:[#allocation6 + $0xde4] ss:$16 sps:$4 sm:$0xff]  }
 0x10e   :  { %3478 = vmatpush2.bf16.msra.mxu1 %v5636_v18  ;;  %3438 = vmatprep.subr.bf16.mxu0 %v5641_v19  ;;  %v5710_v18 = vld [vmem:[#allocation6 + $0xfe4] ss:$16 sps:$4 sm:$0xff]   ;;  %v5705_v19 = vld [vmem:[#allocation6 + $0xde0] ss:$16 sps:$4 sm:$0xff]  }
 0x10f   :  { %3479 = vmatprep.subr.bf16.mxu1 %v5644_v20  ;;  %v5708_v20 = vld [vmem:[#allocation6 + $0xfe0] ss:$16 sps:$4 sm:$0xff]  }
 0x111   :  { %3439 = vmatpush2.bf16.msra.mxu0 %v5639_v23  ;;  %v5713_v23 = vld [vmem:[#allocation6 + $0xdc4] ss:$16 sps:$4 sm:$0xff]  }
 0x112   :  { %3480 = vmatpush2.bf16.msra.mxu1 %v5642_v24  ;;  %3440 = vmatprep.subr.bf16.mxu0 %v5647_v25  ;;  %v5716_v24 = vld [vmem:[#allocation6 + $0xfc4] ss:$16 sps:$4 sm:$0xff]   ;;  %v5711_v25 = vld [vmem:[#allocation6 + $0xdc0] ss:$16 sps:$4 sm:$0xff]  }
 0x113   :  { %3481 = vmatprep.subr.bf16.mxu1 %v5650_v26  ;;  %v5714_v26 = vld [vmem:[#allocation6 + $0xfc0] ss:$16 sps:$4 sm:$0xff]  }
 0x115   :  { %3441 = vmatpush2.bf16.msra.mxu0 %v5645_v27  ;;  %v5719_v27 = vld [vmem:[#allocation6 + $0xda4] ss:$16 sps:$4 sm:$0xff]  }
 0x116   :  { %3482 = vmatpush2.bf16.msra.mxu1 %v5648_v28  ;;  %3442 = vmatprep.subr.bf16.mxu0 %v5653_v29  ;;  %v5722_v28 = vld [vmem:[#allocation6 + $0xfa4] ss:$16 sps:$4 sm:$0xff]   ;;  %v5717_v29 = vld [vmem:[#allocation6 + $0xda0] ss:$16 sps:$4 sm:$0xff]  }
 0x117   :  { %3483 = vmatprep.subr.bf16.mxu1 %v5656_v31  ;;  %v5720_v31 = vld [vmem:[#allocation6 + $0xfa0] ss:$16 sps:$4 sm:$0xff]  }
 0x119   :  { %3443 = vmatpush2.bf16.msra.mxu0 %v5651_v32  ;;  %v5725_v32 = vld [vmem:[#allocation6 + $0xd84] ss:$16 sps:$4 sm:$0xff]  }
 0x11a   :  { %3484 = vmatpush2.bf16.msra.mxu1 %v5654_v34  ;;  %3494 = vmatprep.subr.bf16.mxu0 %v5659_v37  ;;  %v5728_v34 = vld [vmem:[#allocation6 + $0xf84] ss:$16 sps:$4 sm:$0xff]  }
 0x11b   :  { %3535 = vmatprep.subr.bf16.mxu1 %v5662_v39  ;;  %v5731_v37 = vld [vmem:[#allocation6 + $0xd64] ss:$16 sps:$4 sm:$0xff]  }
 0x11c   :  { %3445 = vmatmul.mubr.bf16.vlgmr.msra.gmra.mxu0 %v6540_v43  ;;  %v5734_v39 = vld [vmem:[#allocation6 + $0xf64] ss:$16 sps:$4 sm:$0xff]  }
 0x11d   :  { %3486 = vmatmul.mubr.bf16.vlgmr.msra.gmra.mxu1 %v6542_v44  ;;  %3495 = vmatpush1.bf16.msra.mxu0 %v5657_v40  ;;  %v5729_v40 = vld [vmem:[#allocation6 + $0xd60] ss:$16 sps:$4 sm:$0xff]  }
 0x11e   :  { %3536 = vmatpush1.bf16.msra.mxu1 %v5660_v46  ;;  %3496 = vmatprep.subr.bf16.mxu0 %v5665_v47  ;;  %v5740_v46 = vld [vmem:[#allocation6 + $0xf44] ss:$16 sps:$4 sm:$0xff]   ;;  %v5735_v47 = vld [vmem:[#allocation6 + $0xd40] ss:$16 sps:$4 sm:$0xff]  }
 0x11f   :  { %3537 = vmatprep.subr.bf16.mxu1 %v5668_v48  ;;  %3526 = vmatprep.mubr.bf16.mxu0 %v6544_v49  ;;  %v5738_v48 = vld [vmem:[#allocation6 + $0xf40] ss:$16 sps:$4 sm:$0xff]  }
 0x120   :  { %3567 = vmatprep.mubr.bf16.mxu1 %v6546_v51 }
 0x121   :  { %3497 = vmatpush1.bf16.msra.mxu0 %v5663_v52  ;;  %v668_v52 = vlaneseq }
 0x122   :  { %3538 = vmatpush1.bf16.msra.mxu1 %v5666_v54  ;;  %3498 = vmatprep.subr.bf16.mxu0 %v5671_v55  ;;  %v5743_v54 = vld [vmem:[#allocation6 + $0xd24] ss:$16 sps:$4 sm:$0xff]  }
 0x123   :  { %3539 = vmatprep.subr.bf16.mxu1 %v5674_v56  ;;  %v5746_v55 = vld [vmem:[#allocation6 + $0xf24] ss:$16 sps:$4 sm:$0xff]   ;;  %v5741_v56 = vld [vmem:[#allocation6 + $0xd20] ss:$16 sps:$4 sm:$0xff]  }
 0x125   :  { %3499 = vmatpush1.bf16.msra.mxu0 %v5669_v57  ;;  %v5744_v57 = vld [vmem:[#allocation6 + $0xf20] ss:$16 sps:$4 sm:$0xff]  }
 0x126   :  { %3540 = vmatpush1.bf16.msra.mxu1 %v5672_v58  ;;  %3500 = vmatprep.subr.bf16.mxu0 %v5677_v59  ;;  %v6552_v58 = vshrl.u32 %v668_v52, 7  ;;  %v5749_v59 = vld [vmem:[#allocation6 + $0xd04] ss:$16 sps:$4 sm:$0xff]   ;;  %v5788_v52 = vld [vmem:[#allocation6 + $0x24c] ss:$16 sps:$4 sm:$0xff]  }
 0x127   :  { %3541 = vmatprep.subr.bf16.mxu1 %v5680_v60  ;;  %v5752_v60 = vld [vmem:[#allocation6 + $0xf04] ss:$16 sps:$4 sm:$0xff]  }
 0x129   :  { %3501 = vmatpush1.bf16.msra.mxu0 %v5675_v61  ;;  %v5747_v61 = vld [vmem:[#allocation6 + $0xd00] ss:$16 sps:$4 sm:$0xff]  }
 0x12a   :  { %3542 = vmatpush1.bf16.msra.mxu1 %v5678_v62  ;;  %3502 = vmatprep.subr.bf16.mxu0 %v5683_v63  ;;  %v5750_v62 = vld [vmem:[#allocation6 + $0xf00] ss:$16 sps:$4 sm:$0xff]  }
 0x12b   :  { %3543 = vmatprep.subr.bf16.mxu1 %v5686_v0  ;;  %v666_v63 = vld [vmem:[#allocation8] sm:$0xf] }
 0x12c   :  { %v134_v0 = vld [vmem:[#allocation3 + $0x60] sm:$0xff] }
 0x12d   :  { %3503 = vmatpush1.bf16.msra.mxu0 %v5681_v1  ;;  %v670_v1 = vsub.s32 0, %v6552_v58 }
 0x12e   :  { %3544 = vmatpush1.bf16.msra.mxu1 %v5684_v2  ;;  %3504 = vmatprep.subr.bf16.mxu0 %v5689_v3  ;;  %v136_v2 = vld [vmem:[#allocation3 + $0x70] sm:$0xff]  ;;  %v5755_v3 = vld [vmem:[#allocation6 + $0xec] ss:$16 sps:$4 sm:$0xff]  }
 0x12f   :  { %3545 = vmatprep.subr.bf16.mxu1 %v5692_v4  ;;  %v5758_v4 = vld [vmem:[#allocation6 + $0x2ec] ss:$16 sps:$4 sm:$0xff]  }
 0x131   :  { %3505 = vmatpush1.bf16.msra.mxu0 %v5687_v5  ;;  %v674_v5 = vsub.s32 1, %v6552_v58 }
 0x132   :  { %3546 = vmatpush1.bf16.msra.mxu1 %v5690_v6  ;;  %3506 = vmatprep.subr.bf16.mxu0 %v5695_v7  ;;  %v6556_v6 = vpack.c.bf16 %v134_v0, %v134_v0  ;;  %v6558_v7 = vpack.c.bf16 %v136_v2, %v136_v2  ;;  %v5798_v0 = vld [vmem:[#allocation6 + $0x208] ss:$16 sps:$4 sm:$0xff]   ;;  %v5803_v2 = vld [vmem:[#allocation6 + $0x1ec] ss:$16 sps:$4 sm:$0xff]  }
 0x133   :  { %3547 = vmatprep.subr.bf16.mxu1 %v5698_v8  ;;  %v5753_v8 = vld [vmem:[#allocation6 + $0xe8] ss:$16 sps:$4 sm:$0xff]  }
 0x135   :  { %3507 = vmatpush1.bf16.msra.mxu0 %v5693_v11  ;;  %v671_v11 = vrot.slane %v666_v63, %v670_v1 }
 0x136   :  { %3548 = vmatpush1.bf16.msra.mxu1 %v5696_v12  ;;  %3508 = vmatprep.subr.bf16.mxu0 %v5701_v13  ;;  %v5756_v12 = vld [vmem:[#allocation6 + $0x2e8] ss:$16 sps:$4 sm:$0xff]   ;;  %v5761_v13 = vld [vmem:[#allocation6 + $0xcc] ss:$16 sps:$4 sm:$0xff]  }
 0x137   :  { %3549 = vmatprep.subr.bf16.mxu1 %v5704_v14  ;;  %v5764_v14 = vld [vmem:[#allocation6 + $0x2cc] ss:$16 sps:$4 sm:$0xff]  }
 0x139   :  { %3509 = vmatpush1.bf16.msra.mxu0 %v5699_v15  ;;  %v675_v15 = vrot.slane %v666_v63, %v674_v5  ;;  %v5795_v63 = vld [vmem:[#allocation6 + $0x8] ss:$16 sps:$4 sm:$0xff]  }
 0x13a   :  { %3550 = vmatpush1.bf16.msra.mxu1 %v5702_v16  ;;  %3510 = vmatprep.subr.bf16.mxu0 %v5707_v17 }
 0x13b   :  { %3551 = vmatprep.subr.bf16.mxu1 %v5710_v18  ;;  %v5759_v18 = vld [vmem:[#allocation6 + $0xc8] ss:$16 sps:$4 sm:$0xff]  }
 0x13d   :  { %3511 = vmatpush2.bf16.msra.mxu0 %v5705_v19 }
 0x13e   :  { %3552 = vmatpush2.bf16.msra.mxu1 %v5708_v20  ;;  %3512 = vmatprep.subr.bf16.mxu0 %v5713_v23  ;;  %v5762_v20 = vld [vmem:[#allocation6 + $0x2c8] ss:$16 sps:$4 sm:$0xff]  }
 0x13f   :  { %3553 = vmatprep.subr.bf16.mxu1 %v5716_v24 }
 0x141   :  { %3513 = vmatpush2.bf16.msra.mxu0 %v5711_v25  ;;  %v5767_v25 = vld [vmem:[#allocation6 + $0xac] ss:$16 sps:$4 sm:$0xff]  }
 0x142   :  { %3554 = vmatpush2.bf16.msra.mxu1 %v5714_v26  ;;  %3514 = vmatprep.subr.bf16.mxu0 %v5719_v27  ;;  %v5770_v26 = vld [vmem:[#allocation6 + $0x2ac] ss:$16 sps:$4 sm:$0xff]  }
 0x143   :  { %3555 = vmatprep.subr.bf16.mxu1 %v5722_v28 }
 0x145   :  { %3515 = vmatpush2.bf16.msra.mxu0 %v5717_v29 }
 0x146   :  { %3556 = vmatpush2.bf16.msra.mxu1 %v5720_v31  ;;  %3516 = vmatprep.subr.bf16.mxu0 %v5725_v32  ;;  %v5765_v32 = vld [vmem:[#allocation6 + $0xa8] ss:$16 sps:$4 sm:$0xff]  }
 0x147   :  { %3557 = vmatprep.subr.bf16.mxu1 %v5728_v34 }
 0x149   :  { %3517 = vmatpush2.bf16.msra.mxu0 %v5723_v35  ;;  %v5768_v35 = vld [vmem:[#allocation6 + $0x2a8] ss:$16 sps:$4 sm:$0xff]  }
 0x14a   :  { %3558 = vmatpush2.bf16.msra.mxu1 %v5726_v36  ;;  %3518 = vmatprep.subr.bf16.mxu0 %v5731_v37 }
 0x14b   :  { %3559 = vmatprep.subr.bf16.mxu1 %v5734_v39  ;;  %v5773_v39 = vld [vmem:[#allocation6 + $0x8c] ss:$16 sps:$4 sm:$0xff]  }
 0x14d   :  { %3519 = vmatpush2.bf16.msra.mxu0 %v5729_v40  ;;  %v5776_v40 = vld [vmem:[#allocation6 + $0x28c] ss:$16 sps:$4 sm:$0xff]  }
 0x14e   :  { %3560 = vmatpush2.bf16.msra.mxu1 %v5732_v42  ;;  %3520 = vmatprep.subr.bf16.mxu0 %v5737_v45  ;;  %v5771_v42 = vld [vmem:[#allocation6 + $0x88] ss:$16 sps:$4 sm:$0xff]   ;;  %v5782_v45 = vld [vmem:[#allocation6 + $0x26c] ss:$16 sps:$4 sm:$0xff]  }
 0x14f   :  { %3561 = vmatprep.subr.bf16.mxu1 %v5740_v46  ;;  %v5777_v46 = vld [vmem:[#allocation6 + $0x68] ss:$16 sps:$4 sm:$0xff]  }
 0x151   :  { %3521 = vmatpush2.bf16.msra.mxu0 %v5735_v47  ;;  %v5780_v47 = vld [vmem:[#allocation6 + $0x268] ss:$16 sps:$4 sm:$0xff]  }
 0x152   :  { %3562 = vmatpush2.bf16.msra.mxu1 %v5738_v48  ;;  %3522 = vmatprep.subr.bf16.mxu0 %v5743_v54  ;;  %v5785_v48 = vld [vmem:[#allocation6 + $0x4c] ss:$16 sps:$4 sm:$0xff]   ;;  %v5783_v54 = vld [vmem:[#allocation6 + $0x48] ss:$16 sps:$4 sm:$0xff]  }
 0x153   :  { %3563 = vmatprep.subr.bf16.mxu1 %v5746_v55  ;;  %v5786_v55 = vld [vmem:[#allocation6 + $0x248] ss:$16 sps:$4 sm:$0xff]  }
 0x155   :  { %3523 = vmatpush2.bf16.msra.mxu0 %v5741_v56  ;;  %v5791_v56 = vld [vmem:[#allocation6 + $0x2c] ss:$16 sps:$4 sm:$0xff]  }
 0x156   :  { %3564 = vmatpush2.bf16.msra.mxu1 %v5744_v57  ;;  %3524 = vmatprep.subr.bf16.mxu0 %v5749_v59  ;;  %v5794_v57 = vld [vmem:[#allocation6 + $0x22c] ss:$16 sps:$4 sm:$0xff]   ;;  %v5789_v59 = vld [vmem:[#allocation6 + $0x28] ss:$16 sps:$4 sm:$0xff]  }
 0x157   :  { %3565 = vmatprep.subr.bf16.mxu1 %v5752_v60  ;;  %v5792_v60 = vld [vmem:[#allocation6 + $0x228] ss:$16 sps:$4 sm:$0xff]  }
 0x159   :  { %3525 = vmatpush2.bf16.msra.mxu0 %v5747_v61  ;;  %v5797_v61 = vld [vmem:[#allocation6 + $0xc] ss:$16 sps:$4 sm:$0xff]  }
 0x15a   :  { %3566 = vmatpush2.bf16.msra.mxu1 %v5750_v62  ;;  %3576 = vmatprep.subr.bf16.mxu0 %v5755_v3  ;;  %v5800_v62 = vld [vmem:[#allocation6 + $0x20c] ss:$16 sps:$4 sm:$0xff]  }
 0x15b   :  { %3617 = vmatprep.subr.bf16.mxu1 %v5758_v4  ;;  %v5806_v3 = vld [vmem:[#allocation6 + $0x3ec] ss:$16 sps:$4 sm:$0xff]   ;;  %v5801_v4 = vld [vmem:[#allocation6 + $0x1e8] ss:$16 sps:$4 sm:$0xff]  }
 0x15c   :  { %v3282_v16 = vpop.f32.mrf.mxu0  ;;  %3527 = vmatmul.mubr.bf16.vlgmr.msra.gmra.mxu0 %v6556_v6 }
 0x15d   :  { %v3323_v17 = vpop.f32.mrf.mxu1  ;;  %3568 = vmatmul.mubr.bf16.vlgmr.msra.gmra.mxu1 %v6558_v7  ;;  %v3283_v19 = vadd.f32 %v3282_v16, %v671_v11  ;;  %3577 = vmatpush1.bf16.msra.mxu0 %v5753_v8  ;;  %v5804_v8 = vld [vmem:[#allocation6 + $0x3e8] ss:$16 sps:$4 sm:$0xff]   ;;  %v5809_v11 = vld [vmem:[#allocation6 + $0x1cc] ss:$16 sps:$4 sm:$0xff]  }
 0x15e   :  { %3618 = vmatpush1.bf16.msra.mxu1 %v5756_v12  ;;  %v3284_v23 = vpop.f32.mrf.mxu0  ;;  %3578 = vmatprep.subr.bf16.mxu0 %v5761_v13  ;;  %v5812_v12 = vld [vmem:[#allocation6 + $0x3cc] ss:$16 sps:$4 sm:$0xff]   ;;  %v5807_v13 = vld [vmem:[#allocation6 + $0x1c8] ss:$16 sps:$4 sm:$0xff]  }
 0x15f   :  { %v3325_v24 = vpop.f32.mrf.mxu1  ;;  %3619 = vmatprep.subr.bf16.mxu1 %v5764_v14  ;;  %v6566_v27 = vadd.f32 %v3323_v17, %v3283_v19  ;;  %v3285_v28 = vadd.f32 %v3284_v23, %v675_v15  ;;  %3608 = vmatprep.mubr.bf16.mxu0 %v6510_v50  ;;  %v5774_v50 = vld [vmem:[#allocation6 + $0x288] ss:$16 sps:$4 sm:$0xff]   ;;  %v5815_v15 = vld [vmem:[#allocation6 + $0x1ac] ss:$16 sps:$4 sm:$0xff]  }
 0x160   :  { %3649 = vmatprep.mubr.bf16.mxu1 %v6512_v53  ;;  %v3286_v29 = vpop.f32.mrf.mxu0  ;;  %v5779_v53 = vld [vmem:[#allocation6 + $0x6c] ss:$16 sps:$4 sm:$0xff]   ;;  %v5810_v14 = vld [vmem:[#allocation6 + $0x3c8] ss:$16 sps:$4 sm:$0xff]  }
 0x161   :  { %v3327_v31 = vpop.f32.mrf.mxu1  ;;  %v6570_v34 = vadd.f32 %v3325_v24, %v3285_v28  ;;  %3579 = vmatpush1.bf16.msra.mxu0 %v5759_v18  ;;  %v5818_v16 = vld [vmem:[#allocation6 + $0x3ac] ss:$16 sps:$4 sm:$0xff]   ;;  %v5813_v17 = vld [vmem:[#allocation6 + $0x1a8] ss:$16 sps:$4 sm:$0xff]  }
 0x162   :  { %3620 = vmatpush1.bf16.msra.mxu1 %v5762_v20  ;;  %v3287_v36 = vpop.f32.mrf.mxu0  ;;  %3580 = vmatprep.subr.bf16.mxu0 %v5767_v25  ;;  %v5816_v18 = vld [vmem:[#allocation6 + $0x3a8] ss:$16 sps:$4 sm:$0xff]   ;;  %v5821_v19 = vld [vmem:[#allocation6 + $0x18c] ss:$16 sps:$4 sm:$0xff]  }
 0x163   :  { %v3328_v37 = vpop.f32.mrf.mxu1  ;;  %3621 = vmatprep.subr.bf16.mxu1 %v5770_v26  ;;  %v5824_v20 = vld [vmem:[#allocation6 + $0x38c] ss:$16 sps:$4 sm:$0xff]   ;;  %v5819_v23 = vld [vmem:[#allocation6 + $0x188] ss:$16 sps:$4 sm:$0xff]  }
 0x164   :  { %v5822_v24 = vld [vmem:[#allocation6 + $0x388] ss:$16 sps:$4 sm:$0xff]   ;;  %v5827_v25 = vld [vmem:[#allocation6 + $0x16c] ss:$16 sps:$4 sm:$0xff]  }
 0x165   :  { %3581 = vmatpush1.bf16.msra.mxu0 %v5765_v32  ;;  %v5830_v26 = vld [vmem:[#allocation6 + $0x36c] ss:$16 sps:$4 sm:$0xff]   ;;  %v5825_v28 = vld [vmem:[#allocation6 + $0x168] ss:$16 sps:$4 sm:$0xff]  }
 0x166   :  { %3622 = vmatpush1.bf16.msra.mxu1 %v5768_v35  ;;  %3582 = vmatprep.subr.bf16.mxu0 %v5773_v39  ;;  %v5828_v29 = vld [vmem:[#allocation6 + $0x368] ss:$16 sps:$4 sm:$0xff]   ;;  %v5833_v31 = vld [vmem:[#allocation6 + $0x14c] ss:$16 sps:$4 sm:$0xff]  }
 0x167   :  { %3623 = vmatprep.subr.bf16.mxu1 %v5776_v40  ;;  %v5836_v32 = vld [vmem:[#allocation6 + $0x34c] ss:$16 sps:$4 sm:$0xff]   ;;  %v5831_v35 = vld [vmem:[#allocation6 + $0x148] ss:$16 sps:$4 sm:$0xff]  }
 0x168   :  { %v5834_v36 = vld [vmem:[#allocation6 + $0x348] ss:$16 sps:$4 sm:$0xff]   ;;  %v5839_v37 = vld [vmem:[#allocation6 + $0x12c] ss:$16 sps:$4 sm:$0xff]  }
 0x169   :  { %3583 = vmatpush1.bf16.msra.mxu0 %v5771_v42  ;;  %v5842_v39 = vld [vmem:[#allocation6 + $0x32c] ss:$16 sps:$4 sm:$0xff]   ;;  %v5837_v40 = vld [vmem:[#allocation6 + $0x128] ss:$16 sps:$4 sm:$0xff]  }
 0x16a   :  { %3624 = vmatpush1.bf16.msra.mxu1 %v5774_v50  ;;  %3584 = vmatprep.subr.bf16.mxu0 %v5779_v53  ;;  %v5840_v42 = vld [vmem:[#allocation6 + $0x328] ss:$16 sps:$4 sm:$0xff]   ;;  %v5845_v50 = vld [vmem:[#allocation6 + $0x10c] ss:$16 sps:$4 sm:$0xff]  }
 0x16b   :  { %3625 = vmatprep.subr.bf16.mxu1 %v5782_v45  ;;  %v5848_v53 = vld [vmem:[#allocation6 + $0x30c] ss:$16 sps:$4 sm:$0xff]   ;;  %v5843_v45 = vld [vmem:[#allocation6 + $0x108] ss:$16 sps:$4 sm:$0xff]  }
 0x16d   :  { %3585 = vmatpush1.bf16.msra.mxu0 %v5777_v46  ;;  %v5846_v46 = vld [vmem:[#allocation6 + $0x308] ss:$16 sps:$4 sm:$0xff]  }
 0x16e   :  { %3626 = vmatpush1.bf16.msra.mxu1 %v5780_v47  ;;  %3586 = vmatprep.subr.bf16.mxu0 %v5785_v48  ;;  %v5851_v47 = vld [vmem:[#allocation6 + $0x4ec] ss:$16 sps:$4 sm:$0xff]  }
 0x16f   :  { %3627 = vmatprep.subr.bf16.mxu1 %v5788_v52  ;;  %v5854_v48 = vld [vmem:[#allocation6 + $0x6ec] ss:$16 sps:$4 sm:$0xff]   ;;  %v5849_v52 = vld [vmem:[#allocation6 + $0x4e8] ss:$16 sps:$4 sm:$0xff]  }
 0x171   :  { %3587 = vmatpush1.bf16.msra.mxu0 %v5783_v54  ;;  %v5852_v54 = vld [vmem:[#allocation6 + $0x6e8] ss:$16 sps:$4 sm:$0xff]  }
 0x172   :  { %3628 = vmatpush1.bf16.msra.mxu1 %v5786_v55  ;;  %3588 = vmatprep.subr.bf16.mxu0 %v5791_v56  ;;  %v5857_v55 = vld [vmem:[#allocation6 + $0x4cc] ss:$16 sps:$4 sm:$0xff]  }
 0x173   :  { %3629 = vmatprep.subr.bf16.mxu1 %v5794_v57  ;;  %v5860_v56 = vld [vmem:[#allocation6 + $0x6cc] ss:$16 sps:$4 sm:$0xff]   ;;  %v5855_v57 = vld [vmem:[#allocation6 + $0x4c8] ss:$16 sps:$4 sm:$0xff]  }
 0x175   :  { %3589 = vmatpush1.bf16.msra.mxu0 %v5789_v59  ;;  %v5858_v59 = vld [vmem:[#allocation6 + $0x6c8] ss:$16 sps:$4 sm:$0xff]  }
 0x176   :  { %3630 = vmatpush1.bf16.msra.mxu1 %v5792_v60  ;;  %3590 = vmatprep.subr.bf16.mxu0 %v5797_v61 }
 0x177   :  { %3631 = vmatprep.subr.bf16.mxu1 %v5800_v62 }
 0x179   :  { %3591 = vmatpush1.bf16.msra.mxu0 %v5795_v63 }
 0x17a   :  { %3632 = vmatpush1.bf16.msra.mxu1 %v5798_v0  ;;  %3592 = vmatprep.subr.bf16.mxu0 %v5803_v2  ;;  %v5863_v2 = vld [vmem:[#allocation6 + $0x4ac] ss:$16 sps:$4 sm:$0xff]  }
 0x17b   :  { %3633 = vmatprep.subr.bf16.mxu1 %v5806_v3  ;;  %v5866_v3 = vld [vmem:[#allocation6 + $0x6ac] ss:$16 sps:$4 sm:$0xff]  }
 0x17d   :  { %3593 = vmatpush2.bf16.msra.mxu0 %v5801_v4 }
 0x17e   :  { %3634 = vmatpush2.bf16.msra.mxu1 %v5804_v8  ;;  %3594 = vmatprep.subr.bf16.mxu0 %v5809_v11  ;;  %v5861_v11 = vld [vmem:[#allocation6 + $0x4a8] ss:$16 sps:$4 sm:$0xff]  }
 0x17f   :  { %3635 = vmatprep.subr.bf16.mxu1 %v5812_v12  ;;  %v5864_v12 = vld [vmem:[#allocation6 + $0x6a8] ss:$16 sps:$4 sm:$0xff]  }
 0x181   :  { %3595 = vmatpush2.bf16.msra.mxu0 %v5807_v13 }
 0x182   :  { %3636 = vmatpush2.bf16.msra.mxu1 %v5810_v14  ;;  %3596 = vmatprep.subr.bf16.mxu0 %v5815_v15  ;;  %v5869_v15 = vld [vmem:[#allocation6 + $0x48c] ss:$16 sps:$4 sm:$0xff]  }
 0x183   :  { %3637 = vmatprep.subr.bf16.mxu1 %v5818_v16  ;;  %v5872_v16 = vld [vmem:[#allocation6 + $0x68c] ss:$16 sps:$4 sm:$0xff]  }
 0x185   :  { %3597 = vmatpush2.bf16.msra.mxu0 %v5813_v17  ;;  %v5870_v17 = vld [vmem:[#allocation6 + $0x688] ss:$16 sps:$4 sm:$0xff]  }
 0x186   :  { %3638 = vmatpush2.bf16.msra.mxu1 %v5816_v18  ;;  %3598 = vmatprep.subr.bf16.mxu0 %v5821_v19  ;;  %v5873_v18 = vld [vmem:[#allocation6 + $0x468] ss:$16 sps:$4 sm:$0xff]  }
 0x187   :  { %3639 = vmatprep.subr.bf16.mxu1 %v5824_v20  ;;  %v5876_v19 = vld [vmem:[#allocation6 + $0x668] ss:$16 sps:$4 sm:$0xff]   ;;  %v5881_v20 = vld [vmem:[#allocation6 + $0x44c] ss:$16 sps:$4 sm:$0xff]  }
 0x189   :  { %3599 = vmatpush2.bf16.msra.mxu0 %v5819_v23  ;;  %v5884_v23 = vld [vmem:[#allocation6 + $0x64c] ss:$16 sps:$4 sm:$0xff]  }
 0x18a   :  { %3640 = vmatpush2.bf16.msra.mxu1 %v5822_v24  ;;  %3600 = vmatprep.subr.bf16.mxu0 %v5827_v25  ;;  %v5879_v24 = vld [vmem:[#allocation6 + $0x448] ss:$16 sps:$4 sm:$0xff]  }
 0x18b   :  { %3641 = vmatprep.subr.bf16.mxu1 %v5830_v26  ;;  %v5882_v25 = vld [vmem:[#allocation6 + $0x648] ss:$16 sps:$4 sm:$0xff]   ;;  %v5887_v26 = vld [vmem:[#allocation6 + $0x42c] ss:$16 sps:$4 sm:$0xff]  }
 0x18d   :  { %3601 = vmatpush2.bf16.msra.mxu0 %v5825_v28  ;;  %v5890_v28 = vld [vmem:[#allocation6 + $0x62c] ss:$16 sps:$4 sm:$0xff]  }
 0x18e   :  { %3642 = vmatpush2.bf16.msra.mxu1 %v5828_v29  ;;  %3602 = vmatprep.subr.bf16.mxu0 %v5833_v31  ;;  %v5885_v29 = vld [vmem:[#allocation6 + $0x428] ss:$16 sps:$4 sm:$0xff]  }
 0x18f   :  { %3643 = vmatprep.subr.bf16.mxu1 %v5836_v32  ;;  %v5888_v31 = vld [vmem:[#allocation6 + $0x628] ss:$16 sps:$4 sm:$0xff]   ;;  %v5893_v32 = vld [vmem:[#allocation6 + $0x40c] ss:$16 sps:$4 sm:$0xff]  }
 0x191   :  { %3603 = vmatpush2.bf16.msra.mxu0 %v5831_v35  ;;  %v5896_v35 = vld [vmem:[#allocation6 + $0x60c] ss:$16 sps:$4 sm:$0xff]  }
 0x192   :  { %3644 = vmatpush2.bf16.msra.mxu1 %v5834_v36  ;;  %3604 = vmatprep.subr.bf16.mxu0 %v5839_v37  ;;  %v5891_v36 = vld [vmem:[#allocation6 + $0x408] ss:$16 sps:$4 sm:$0xff]  }
 0x193   :  { %3645 = vmatprep.subr.bf16.mxu1 %v5842_v39  ;;  %v5894_v37 = vld [vmem:[#allocation6 + $0x608] ss:$16 sps:$4 sm:$0xff]   ;;  %v5899_v39 = vld [vmem:[#allocation6 + $0x5ec] ss:$16 sps:$4 sm:$0xff]  }
 0x195   :  { %3605 = vmatpush2.bf16.msra.mxu0 %v5837_v40  ;;  %v5902_v40 = vld [vmem:[#allocation6 + $0x7ec] ss:$16 sps:$4 sm:$0xff]  }
 0x196   :  { %3646 = vmatpush2.bf16.msra.mxu1 %v5840_v42  ;;  %3606 = vmatprep.subr.bf16.mxu0 %v5845_v50  ;;  %v5897_v42 = vld [vmem:[#allocation6 + $0x5e8] ss:$16 sps:$4 sm:$0xff]  }
 0x197   :  { %3647 = vmatprep.subr.bf16.mxu1 %v5848_v53  ;;  %v5900_v50 = vld [vmem:[#allocation6 + $0x7e8] ss:$16 sps:$4 sm:$0xff]   ;;  %v5905_v53 = vld [vmem:[#allocation6 + $0x5cc] ss:$16 sps:$4 sm:$0xff]  }
 0x199   :  { %3607 = vmatpush2.bf16.msra.mxu0 %v5843_v45  ;;  %v5908_v45 = vld [vmem:[#allocation6 + $0x7cc] ss:$16 sps:$4 sm:$0xff]  }
 0x19a   :  { %3648 = vmatpush2.bf16.msra.mxu1 %v5846_v46  ;;  %3658 = vmatprep.subr.bf16.mxu0 %v5851_v47  ;;  %v5903_v46 = vld [vmem:[#allocation6 + $0x5c8] ss:$16 sps:$4 sm:$0xff]  }
 0x19b   :  { %3699 = vmatprep.subr.bf16.mxu1 %v5854_v48  ;;  %v5906_v47 = vld [vmem:[#allocation6 + $0x7c8] ss:$16 sps:$4 sm:$0xff]   ;;  %v5911_v48 = vld [vmem:[#allocation6 + $0x5ac] ss:$16 sps:$4 sm:$0xff]  }
 0x19c   :  { %v3364_v60 = vpop.f32.mrf.mxu0  ;;  %3609 = vmatmul.mubr.bf16.vlgmr.msra.gmra.mxu0 %v6516_v9 }
 0x19d   :  { %v3405_v61 = vpop.f32.mrf.mxu1  ;;  %3650 = vmatmul.mubr.bf16.vlgmr.msra.gmra.mxu1 %v6518_v10  ;;  %v3365_v62 = vadd.f32 %v3364_v60, %v6566_v27  ;;  %3659 = vmatpush1.bf16.msra.mxu0 %v5849_v52  ;;  %v5914_v52 = vld [vmem:[#allocation6 + $0x7ac] ss:$16 sps:$4 sm:$0xff]   ;;  %v5918_v60 = vld [vmem:[#allocation6 + $0x788] ss:$16 sps:$4 sm:$0xff]  }
 0x19e   :  { %3700 = vmatpush1.bf16.msra.mxu1 %v5852_v54  ;;  %v3366_v63 = vpop.f32.mrf.mxu0  ;;  %3660 = vmatprep.subr.bf16.mxu0 %v5857_v55  ;;  %v5909_v54 = vld [vmem:[#allocation6 + $0x5a8] ss:$16 sps:$4 sm:$0xff]  }
 0x19f   :  { %v3407_v0 = vpop.f32.mrf.mxu1  ;;  %3701 = vmatprep.subr.bf16.mxu1 %v5860_v56  ;;  %v6575_v4 = vadd.f32 %v3405_v61, %v3365_v62  ;;  %v3367_v8 = vadd.f32 %v3366_v63, %v6570_v34  ;;  %3690 = vmatprep.mubr.bf16.mxu0 %v6522_v38  ;;  %v5867_v34 = vld [vmem:[#allocation6 + $0x488] ss:$16 sps:$4 sm:$0xff]   ;;  %v5875_v38 = vld [vmem:[#allocation6 + $0x46c] ss:$16 sps:$4 sm:$0xff]  }
 0x1a0   :  { %3731 = vmatprep.mubr.bf16.mxu1 %v6524_v41  ;;  %v3368_v9 = vpop.f32.mrf.mxu0  ;;  %v5878_v41 = vld [vmem:[#allocation6 + $0x66c] ss:$16 sps:$4 sm:$0xff]   ;;  %v5912_v55 = vld [vmem:[#allocation6 + $0x7a8] ss:$16 sps:$4 sm:$0xff]  }
 0x1a1   :  { %v3409_v10 = vpop.f32.mrf.mxu1  ;;  %v6580_v27 = vadd.f32 %v3407_v0, %v3367_v8  ;;  %3661 = vmatpush1.bf16.msra.mxu0 %v5855_v57  ;;  %v5917_v56 = vld [vmem:[#allocation6 + $0x58c] ss:$16 sps:$4 sm:$0xff]   ;;  %v5921_v63 = vld [vmem:[#allocation6 + $0x568] ss:$16 sps:$4 sm:$0xff]  }
 0x1a2   :  { %3702 = vmatpush1.bf16.msra.mxu1 %v5858_v59  ;;  %v3369_v13 = vpop.f32.mrf.mxu0  ;;  %3662 = vmatprep.subr.bf16.mxu0 %v5863_v2  ;;  %v5920_v57 = vld [vmem:[#allocation6 + $0x78c] ss:$16 sps:$4 sm:$0xff]   ;;  %v5915_v59 = vld [vmem:[#allocation6 + $0x588] ss:$16 sps:$4 sm:$0xff]  }
 0x1a3   :  { %v3410_v14 = vpop.f32.mrf.mxu1  ;;  %3703 = vmatprep.subr.bf16.mxu1 %v5866_v3  ;;  %v5923_v61 = vld [vmem:[#allocation6 + $0x56c] ss:$16 sps:$4 sm:$0xff]   ;;  %v5924_v0 = vld [vmem:[#allocation6 + $0x768] ss:$16 sps:$4 sm:$0xff]  }
 0x1a4   :  { %v5926_v62 = vld [vmem:[#allocation6 + $0x76c] ss:$16 sps:$4 sm:$0xff]   ;;  %v5927_v8 = vld [vmem:[#allocation6 + $0x548] ss:$16 sps:$4 sm:$0xff]  }
 0x1a5   :  { %3663 = vmatpush1.bf16.msra.mxu0 %v5861_v11  ;;  %v5929_v2 = vld [vmem:[#allocation6 + $0x54c] ss:$16 sps:$4 sm:$0xff]   ;;  %v5930_v11 = vld [vmem:[#allocation6 + $0x748] ss:$16 sps:$4 sm:$0xff]  }
 0x1a6   :  { %3704 = vmatpush1.bf16.msra.mxu1 %v5864_v12  ;;  %3664 = vmatprep.subr.bf16.mxu0 %v5869_v15  ;;  %v5932_v3 = vld [vmem:[#allocation6 + $0x74c] ss:$16 sps:$4 sm:$0xff]   ;;  %v5933_v10 = vld [vmem:[#allocation6 + $0x528] ss:$16 sps:$4 sm:$0xff]  }
 0x1a7   :  { %3705 = vmatprep.subr.bf16.mxu1 %v5872_v16  ;;  %v5935_v12 = vld [vmem:[#allocation6 + $0x52c] ss:$16 sps:$4 sm:$0xff]   ;;  %v5936_v13 = vld [vmem:[#allocation6 + $0x728] ss:$16 sps:$4 sm:$0xff]  }
 0x1a8   :  { %v5938_v9 = vld [vmem:[#allocation6 + $0x72c] ss:$16 sps:$4 sm:$0xff]   ;;  %v5939_v16 = vld [vmem:[#allocation6 + $0x508] ss:$16 sps:$4 sm:$0xff]  }
 0x1a9   :  { %3665 = vmatpush1.bf16.msra.mxu0 %v5867_v34  ;;  %v5941_v14 = vld [vmem:[#allocation6 + $0x50c] ss:$16 sps:$4 sm:$0xff]   ;;  %v5942_v34 = vld [vmem:[#allocation6 + $0x708] ss:$16 sps:$4 sm:$0xff]  }
 0x1aa   :  { %3706 = vmatpush1.bf16.msra.mxu1 %v5870_v17  ;;  %3666 = vmatprep.subr.bf16.mxu0 %v5875_v38  ;;  %v5944_v15 = vld [vmem:[#allocation6 + $0x70c] ss:$16 sps:$4 sm:$0xff]  }
 0x1ab   :  { %3707 = vmatprep.subr.bf16.mxu1 %v5878_v41  ;;  %v5947_v17 = vld [vmem:[#allocation6 + $0x8ec] ss:$16 sps:$4 sm:$0xff]   ;;  %v5945_v41 = vld [vmem:[#allocation6 + $0x8e8] ss:$16 sps:$4 sm:$0xff]  }
 0x1ac   :  { %v5950_v38 = vld [vmem:[#allocation6 + $0xaec] ss:$16 sps:$4 sm:$0xff]  }
 0x1ad   :  { %3667 = vmatpush1.bf16.msra.mxu0 %v5873_v18  ;;  %v5948_v18 = vld [vmem:[#allocation6 + $0xae8] ss:$16 sps:$4 sm:$0xff]  }
 0x1ae   :  { %3708 = vmatpush1.bf16.msra.mxu1 %v5876_v19  ;;  %3668 = vmatprep.subr.bf16.mxu0 %v5881_v20  ;;  %v5953_v19 = vld [vmem:[#allocation6 + $0x8cc] ss:$16 sps:$4 sm:$0xff]  }
 0x1af   :  { %3709 = vmatprep.subr.bf16.mxu1 %v5884_v23  ;;  %v5956_v20 = vld [vmem:[#allocation6 + $0xacc] ss:$16 sps:$4 sm:$0xff]  }
 0x1b1   :  { %3669 = vmatpush1.bf16.msra.mxu0 %v5879_v24 }
 0x1b2   :  { %3710 = vmatpush1.bf16.msra.mxu1 %v5882_v25  ;;  %3670 = vmatprep.subr.bf16.mxu0 %v5887_v26  ;;  %v5951_v26 = vld [vmem:[#allocation6 + $0x8c8] ss:$16 sps:$4 sm:$0xff]  }
 0x1b3   :  { %3711 = vmatprep.subr.bf16.mxu1 %v5890_v28  ;;  %v5954_v28 = vld [vmem:[#allocation6 + $0xac8] ss:$16 sps:$4 sm:$0xff]  }
 0x1b5   :  { %3671 = vmatpush1.bf16.msra.mxu0 %v5885_v29 }
 0x1b6   :  { %3712 = vmatpush1.bf16.msra.mxu1 %v5888_v31  ;;  %3672 = vmatprep.subr.bf16.mxu0 %v5893_v32  ;;  %v5959_v32 = vld [vmem:[#allocation6 + $0x8ac] ss:$16 sps:$4 sm:$0xff]  }
 0x1b7   :  { %3713 = vmatprep.subr.bf16.mxu1 %v5896_v35  ;;  %v5962_v35 = vld [vmem:[#allocation6 + $0xaac] ss:$16 sps:$4 sm:$0xff]  }
 0x1b9   :  { %3673 = vmatpush1.bf16.msra.mxu0 %v5891_v36 }
 0x1ba   :  { %3714 = vmatpush1.bf16.msra.mxu1 %v5894_v37  ;;  %3674 = vmatprep.subr.bf16.mxu0 %v5899_v39  ;;  %v5957_v39 = vld [vmem:[#allocation6 + $0x8a8] ss:$16 sps:$4 sm:$0xff]  }
 0x1bb   :  { %3715 = vmatprep.subr.bf16.mxu1 %v5902_v40  ;;  %v5960_v40 = vld [vmem:[#allocation6 + $0xaa8] ss:$16 sps:$4 sm:$0xff]  }
 0x1bd   :  { %3675 = vmatpush2.bf16.msra.mxu0 %v5897_v42 }
 0x1be   :  { %3716 = vmatpush2.bf16.msra.mxu1 %v5900_v50  ;;  %3676 = vmatprep.subr.bf16.mxu0 %v5905_v53  ;;  %v5965_v53 = vld [vmem:[#allocation6 + $0x88c] ss:$16 sps:$4 sm:$0xff]  }
 0x1bf   :  { %3717 = vmatprep.subr.bf16.mxu1 %v5908_v45  ;;  %v5968_v45 = vld [vmem:[#allocation6 + $0xa8c] ss:$16 sps:$4 sm:$0xff]  }
 0x1c1   :  { %3677 = vmatpush2.bf16.msra.mxu0 %v5903_v46  ;;  %v5974_v46 = vld [vmem:[#allocation6 + $0xa6c] ss:$16 sps:$4 sm:$0xff]  }
 0x1c2   :  { %3718 = vmatpush2.bf16.msra.mxu1 %v5906_v47  ;;  %3678 = vmatprep.subr.bf16.mxu0 %v5911_v48  ;;  %v5969_v47 = vld [vmem:[#allocation6 + $0x868] ss:$16 sps:$4 sm:$0xff]  }
 0x1c3   :  { %3719 = vmatprep.subr.bf16.mxu1 %v5914_v52  ;;  %v5972_v48 = vld [vmem:[#allocation6 + $0xa68] ss:$16 sps:$4 sm:$0xff]   ;;  %v5977_v52 = vld [vmem:[#allocation6 + $0x84c] ss:$16 sps:$4 sm:$0xff]  }
 0x1c5   :  { %3679 = vmatpush2.bf16.msra.mxu0 %v5909_v54  ;;  %v5980_v54 = vld [vmem:[#allocation6 + $0xa4c] ss:$16 sps:$4 sm:$0xff]  }
 0x1c6   :  { %3720 = vmatpush2.bf16.msra.mxu1 %v5912_v55  ;;  %3680 = vmatprep.subr.bf16.mxu0 %v5917_v56  ;;  %v5975_v55 = vld [vmem:[#allocation6 + $0x848] ss:$16 sps:$4 sm:$0xff]  }
 0x1c7   :  { %3721 = vmatprep.subr.bf16.mxu1 %v5920_v57  ;;  %v5978_v56 = vld [vmem:[#allocation6 + $0xa48] ss:$16 sps:$4 sm:$0xff]   ;;  %v5983_v57 = vld [vmem:[#allocation6 + $0x82c] ss:$16 sps:$4 sm:$0xff]  }
 0x1c9   :  { %3681 = vmatpush2.bf16.msra.mxu0 %v5915_v59  ;;  %v5986_v59 = vld [vmem:[#allocation6 + $0xa2c] ss:$16 sps:$4 sm:$0xff]  }
 0x1ca   :  { %3722 = vmatpush2.bf16.msra.mxu1 %v5918_v60  ;;  %3682 = vmatprep.subr.bf16.mxu0 %v5923_v61  ;;  %v5981_v60 = vld [vmem:[#allocation6 + $0x828] ss:$16 sps:$4 sm:$0xff]  }
 0x1cb   :  { %3723 = vmatprep.subr.bf16.mxu1 %v5926_v62  ;;  %v5984_v61 = vld [vmem:[#allocation6 + $0xa28] ss:$16 sps:$4 sm:$0xff]   ;;  %v5989_v62 = vld [vmem:[#allocation6 + $0x80c] ss:$16 sps:$4 sm:$0xff]  }
 0x1cd   :  { %3683 = vmatpush2.bf16.msra.mxu0 %v5921_v63  ;;  %v5992_v63 = vld [vmem:[#allocation6 + $0xa0c] ss:$16 sps:$4 sm:$0xff]  }
 0x1ce   :  { %3724 = vmatpush2.bf16.msra.mxu1 %v5924_v0  ;;  %3684 = vmatprep.subr.bf16.mxu0 %v5929_v2  ;;  %v5987_v0 = vld [vmem:[#allocation6 + $0x808] ss:$16 sps:$4 sm:$0xff]  }
 0x1cf   :  { %3725 = vmatprep.subr.bf16.mxu1 %v5932_v3  ;;  %v5990_v2 = vld [vmem:[#allocation6 + $0xa08] ss:$16 sps:$4 sm:$0xff]   ;;  %v5995_v3 = vld [vmem:[#allocation6 + $0x9ec] ss:$16 sps:$4 sm:$0xff]  }
 0x1d1   :  { %3685 = vmatpush2.bf16.msra.mxu0 %v5927_v8  ;;  %v5998_v8 = vld [vmem:[#allocation6 + $0xbec] ss:$16 sps:$4 sm:$0xff]  }
 0x1d2   :  { %3726 = vmatpush2.bf16.msra.mxu1 %v5930_v11  ;;  %3686 = vmatprep.subr.bf16.mxu0 %v5935_v12  ;;  %v5993_v11 = vld [vmem:[#allocation6 + $0x9e8] ss:$16 sps:$4 sm:$0xff]  }
 0x1d3   :  { %3727 = vmatprep.subr.bf16.mxu1 %v5938_v9  ;;  %v5996_v12 = vld [vmem:[#allocation6 + $0xbe8] ss:$16 sps:$4 sm:$0xff]   ;;  %v6001_v9 = vld [vmem:[#allocation6 + $0x9cc] ss:$16 sps:$4 sm:$0xff]  }
 0x1d5   :  { %3687 = vmatpush2.bf16.msra.mxu0 %v5933_v10  ;;  %v6004_v10 = vld [vmem:[#allocation6 + $0xbcc] ss:$16 sps:$4 sm:$0xff]  }
 0x1d6   :  { %3728 = vmatpush2.bf16.msra.mxu1 %v5936_v13  ;;  %3688 = vmatprep.subr.bf16.mxu0 %v5941_v14  ;;  %v5999_v13 = vld [vmem:[#allocation6 + $0x9c8] ss:$16 sps:$4 sm:$0xff]  }
 0x1d7   :  { %3729 = vmatprep.subr.bf16.mxu1 %v5944_v15  ;;  %v6002_v14 = vld [vmem:[#allocation6 + $0xbc8] ss:$16 sps:$4 sm:$0xff]   ;;  %v6007_v15 = vld [vmem:[#allocation6 + $0x9ac] ss:$16 sps:$4 sm:$0xff]  }
 0x1d9   :  { %3689 = vmatpush2.bf16.msra.mxu0 %v5939_v16  ;;  %v6010_v16 = vld [vmem:[#allocation6 + $0xbac] ss:$16 sps:$4 sm:$0xff]  }
 0x1da   :  { %3730 = vmatpush2.bf16.msra.mxu1 %v5942_v34  ;;  %3740 = vmatprep.subr.bf16.mxu0 %v5947_v17  ;;  %v6005_v34 = vld [vmem:[#allocation6 + $0x9a8] ss:$16 sps:$4 sm:$0xff]  }
 0x1db   :  { %3781 = vmatprep.subr.bf16.mxu1 %v5950_v38  ;;  %v6008_v17 = vld [vmem:[#allocation6 + $0xba8] ss:$16 sps:$4 sm:$0xff]   ;;  %v6013_v38 = vld [vmem:[#allocation6 + $0x98c] ss:$16 sps:$4 sm:$0xff]  }
 0x1dc   :  { %v3446_v23 = vpop.f32.mrf.mxu0  ;;  %3691 = vmatmul.mubr.bf16.vlgmr.msra.gmra.mxu0 %v6528_v21 }
 0x1dd   :  { %v3487_v24 = vpop.f32.mrf.mxu1  ;;  %3732 = vmatmul.mubr.bf16.vlgmr.msra.gmra.mxu1 %v6530_v22  ;;  %v3447_v25 = vadd.f32 %v3446_v23, %v6575_v4  ;;  %3741 = vmatpush1.bf16.msra.mxu0 %v5945_v41  ;;  %v6016_v41 = vld [vmem:[#allocation6 + $0xb8c] ss:$16 sps:$4 sm:$0xff]  }
 0x1de   :  { %3782 = vmatpush1.bf16.msra.mxu1 %v5948_v18  ;;  %v3448_v29 = vpop.f32.mrf.mxu0  ;;  %3742 = vmatprep.subr.bf16.mxu0 %v5953_v19  ;;  %v6011_v18 = vld [vmem:[#allocation6 + $0x988] ss:$16 sps:$4 sm:$0xff]   ;;  %v6022_v23 = vld [vmem:[#allocation6 + $0xb6c] ss:$16 sps:$4 sm:$0xff]  }
 0x1df   :  { %v3489_v31 = vpop.f32.mrf.mxu1  ;;  %3783 = vmatprep.subr.bf16.mxu1 %v5956_v20  ;;  %v6585_v36 = vadd.f32 %v3487_v24, %v3447_v25  ;;  %v3449_v37 = vadd.f32 %v3448_v29, %v6580_v27  ;;  %3772 = vmatprep.mubr.bf16.mxu0 %v6534_v30  ;;  %v5963_v27 = vld [vmem:[#allocation6 + $0x888] ss:$16 sps:$4 sm:$0xff]   ;;  %v6019_v20 = vld [vmem:[#allocation6 + $0x96c] ss:$16 sps:$4 sm:$0xff]  }
 0x1e0   :  { %3813 = vmatprep.mubr.bf16.mxu1 %v6536_v33  ;;  %v3450_v21 = vpop.f32.mrf.mxu0  ;;  %v5966_v30 = vld [vmem:[#allocation6 + $0xa88] ss:$16 sps:$4 sm:$0xff]   ;;  %v5971_v33 = vld [vmem:[#allocation6 + $0x86c] ss:$16 sps:$4 sm:$0xff]  }
 0x1e1   :  { %v3491_v22 = vpop.f32.mrf.mxu1  ;;  %v6590_v4 = vadd.f32 %v3489_v31, %v3449_v37  ;;  %3743 = vmatpush1.bf16.msra.mxu0 %v5951_v26  ;;  %v6014_v19 = vld [vmem:[#allocation6 + $0xb88] ss:$16 sps:$4 sm:$0xff]   ;;  %v6025_v26 = vld [vmem:[#allocation6 + $0x94c] ss:$16 sps:$4 sm:$0xff]  }
 0x1e2   :  { %3784 = vmatpush1.bf16.msra.mxu1 %v5954_v28  ;;  %v3451_v42 = vpop.f32.mrf.mxu0  ;;  %3744 = vmatprep.subr.bf16.mxu0 %v5959_v32  ;;  %v6017_v24 = vld [vmem:[#allocation6 + $0x968] ss:$16 sps:$4 sm:$0xff]   ;;  %v6028_v28 = vld [vmem:[#allocation6 + $0xb4c] ss:$16 sps:$4 sm:$0xff]  }
 0x1e3   :  { %v3492_v50 = vpop.f32.mrf.mxu1  ;;  %3785 = vmatprep.subr.bf16.mxu1 %v5962_v35  ;;  %v6020_v25 = vld [vmem:[#allocation6 + $0xb68] ss:$16 sps:$4 sm:$0xff]   ;;  %v6031_v32 = vld [vmem:[#allocation6 + $0x92c] ss:$16 sps:$4 sm:$0xff]  }
 0x1e4   :  { %v6023_v29 = vld [vmem:[#allocation6 + $0x948] ss:$16 sps:$4 sm:$0xff]   ;;  %v6034_v35 = vld [vmem:[#allocation6 + $0xb2c] ss:$16 sps:$4 sm:$0xff]  }
 0x1e5   :  { %3745 = vmatpush1.bf16.msra.mxu0 %v5957_v39  ;;  %v6026_v31 = vld [vmem:[#allocation6 + $0xb48] ss:$16 sps:$4 sm:$0xff]   ;;  %v6037_v22 = vld [vmem:[#allocation6 + $0x90c] ss:$16 sps:$4 sm:$0xff]  }
 0x1e6   :  { %3786 = vmatpush1.bf16.msra.mxu1 %v5960_v40  ;;  %3746 = vmatprep.subr.bf16.mxu0 %v5965_v53  ;;  %v6029_v37 = vld [vmem:[#allocation6 + $0x928] ss:$16 sps:$4 sm:$0xff]   ;;  %v6040_v39 = vld [vmem:[#allocation6 + $0xb0c] ss:$16 sps:$4 sm:$0xff]  }
 0x1e7   :  { %3787 = vmatprep.subr.bf16.mxu1 %v5968_v45  ;;  %v6032_v21 = vld [vmem:[#allocation6 + $0xb28] ss:$16 sps:$4 sm:$0xff]   ;;  %v6043_v50 = vld [vmem:[#allocation6 + $0xcec] ss:$16 sps:$4 sm:$0xff]  }
 0x1e8   :  { %v6035_v40 = vld [vmem:[#allocation6 + $0x908] ss:$16 sps:$4 sm:$0xff]   ;;  %v6046_v53 = vld [vmem:[#allocation6 + $0xeec] ss:$16 sps:$4 sm:$0xff]  }
 0x1e9   :  { %3747 = vmatpush1.bf16.msra.mxu0 %v5963_v27  ;;  %v6038_v42 = vld [vmem:[#allocation6 + $0xb08] ss:$16 sps:$4 sm:$0xff]  }
 0x1ea   :  { %3788 = vmatpush1.bf16.msra.mxu1 %v5966_v30  ;;  %3748 = vmatprep.subr.bf16.mxu0 %v5971_v33  ;;  %v6041_v45 = vld [vmem:[#allocation6 + $0xce8] ss:$16 sps:$4 sm:$0xff]   ;;  %v6049_v30 = vld [vmem:[#allocation6 + $0xccc] ss:$16 sps:$4 sm:$0xff]  }
 0x1eb   :  { %3789 = vmatprep.subr.bf16.mxu1 %v5974_v46  ;;  %v6044_v27 = vld [vmem:[#allocation6 + $0xee8] ss:$16 sps:$4 sm:$0xff]   ;;  %v6052_v33 = vld [vmem:[#allocation6 + $0xecc] ss:$16 sps:$4 sm:$0xff]  }
 0x1ed   :  { %3749 = vmatpush1.bf16.msra.mxu0 %v5969_v47 }
 0x1ee   :  { %3790 = vmatpush1.bf16.msra.mxu1 %v5972_v48  ;;  %3750 = vmatprep.subr.bf16.mxu0 %v5977_v52  ;;  %v6047_v52 = vld [vmem:[#allocation6 + $0xcc8] ss:$16 sps:$4 sm:$0xff]  }
 0x1ef   :  { %3791 = vmatprep.subr.bf16.mxu1 %v5980_v54  ;;  %v6050_v54 = vld [vmem:[#allocation6 + $0xec8] ss:$16 sps:$4 sm:$0xff]  }
 0x1f1   :  { %3751 = vmatpush1.bf16.msra.mxu0 %v5975_v55 }
 0x1f2   :  { %3792 = vmatpush1.bf16.msra.mxu1 %v5978_v56  ;;  %3752 = vmatprep.subr.bf16.mxu0 %v5983_v57  ;;  %v6055_v57 = vld [vmem:[#allocation6 + $0xcac] ss:$16 sps:$4 sm:$0xff]  }
 0x1f3   :  { %3793 = vmatprep.subr.bf16.mxu1 %v5986_v59  ;;  %v6058_v59 = vld [vmem:[#allocation6 + $0xeac] ss:$16 sps:$4 sm:$0xff]  }
 0x1f5   :  { %3753 = vmatpush1.bf16.msra.mxu0 %v5981_v60 }
 0x1f6   :  { %3794 = vmatpush1.bf16.msra.mxu1 %v5984_v61  ;;  %3754 = vmatprep.subr.bf16.mxu0 %v5989_v62  ;;  %v6056_v61 = vld [vmem:[#allocation6 + $0xea8] ss:$16 sps:$4 sm:$0xff]  }
 0x1f7   :  { %3795 = vmatprep.subr.bf16.mxu1 %v5992_v63 }
 0x1f9   :  { %3755 = vmatpush1.bf16.msra.mxu0 %v5987_v0  ;;  %v6061_v0 = vld [vmem:[#allocation6 + $0xc8c] ss:$16 sps:$4 sm:$0xff]  }
 0x1fa   :  { %3796 = vmatpush1.bf16.msra.mxu1 %v5990_v2  ;;  %3756 = vmatprep.subr.bf16.mxu0 %v5995_v3  ;;  %v6064_v2 = vld [vmem:[#allocation6 + $0xe8c] ss:$16 sps:$4 sm:$0xff]   ;;  %v6059_v3 = vld [vmem:[#allocation6 + $0xc88] ss:$16 sps:$4 sm:$0xff]  }
 0x1fb   :  { %3797 = vmatprep.subr.bf16.mxu1 %v5998_v8  ;;  %v6062_v8 = vld [vmem:[#allocation6 + $0xe88] ss:$16 sps:$4 sm:$0xff]  }
 0x1fd   :  { %3757 = vmatpush2.bf16.msra.mxu0 %v5993_v11  ;;  %v6065_v11 = vld [vmem:[#allocation6 + $0xc68] ss:$16 sps:$4 sm:$0xff]  }
 0x1fe   :  { %3798 = vmatpush2.bf16.msra.mxu1 %v5996_v12  ;;  %3758 = vmatprep.subr.bf16.mxu0 %v6001_v9  ;;  %v6068_v12 = vld [vmem:[#allocation6 + $0xe68] ss:$16 sps:$4 sm:$0xff]   ;;  %v6073_v9 = vld [vmem:[#allocation6 + $0xc4c] ss:$16 sps:$4 sm:$0xff]  }
 0x1ff   :  { %3799 = vmatprep.subr.bf16.mxu1 %v6004_v10  ;;  %v6076_v10 = vld [vmem:[#allocation6 + $0xe4c] ss:$16 sps:$4 sm:$0xff]  }
 0x201   :  { %3759 = vmatpush2.bf16.msra.mxu0 %v5999_v13  ;;  %v6071_v13 = vld [vmem:[#allocation6 + $0xc48] ss:$16 sps:$4 sm:$0xff]  }
 0x202   :  { %3800 = vmatpush2.bf16.msra.mxu1 %v6002_v14  ;;  %3760 = vmatprep.subr.bf16.mxu0 %v6007_v15  ;;  %v6074_v14 = vld [vmem:[#allocation6 + $0xe48] ss:$16 sps:$4 sm:$0xff]   ;;  %v6079_v15 = vld [vmem:[#allocation6 + $0xc2c] ss:$16 sps:$4 sm:$0xff]  }
 0x203   :  { %3801 = vmatprep.subr.bf16.mxu1 %v6010_v16  ;;  %v6082_v16 = vld [vmem:[#allocation6 + $0xe2c] ss:$16 sps:$4 sm:$0xff]  }
 0x205   :  { %3761 = vmatpush2.bf16.msra.mxu0 %v6005_v34  ;;  %v6077_v34 = vld [vmem:[#allocation6 + $0xc28] ss:$16 sps:$4 sm:$0xff]  }
 0x206   :  { %3802 = vmatpush2.bf16.msra.mxu1 %v6008_v17  ;;  %3762 = vmatprep.subr.bf16.mxu0 %v6013_v38  ;;  %v6080_v17 = vld [vmem:[#allocation6 + $0xe28] ss:$16 sps:$4 sm:$0xff]   ;;  %v6085_v38 = vld [vmem:[#allocation6 + $0xc0c] ss:$16 sps:$4 sm:$0xff]  }
 0x207   :  { %3803 = vmatprep.subr.bf16.mxu1 %v6016_v41  ;;  %v6088_v41 = vld [vmem:[#allocation6 + $0xe0c] ss:$16 sps:$4 sm:$0xff]  }
 0x209   :  { %3763 = vmatpush2.bf16.msra.mxu0 %v6011_v18  ;;  %v6083_v18 = vld [vmem:[#allocation6 + $0xc08] ss:$16 sps:$4 sm:$0xff]  }
 0x20a   :  { %3804 = vmatpush2.bf16.msra.mxu1 %v6014_v19  ;;  %3764 = vmatprep.subr.bf16.mxu0 %v6019_v20  ;;  %v6086_v19 = vld [vmem:[#allocation6 + $0xe08] ss:$16 sps:$4 sm:$0xff]   ;;  %v6091_v20 = vld [vmem:[#allocation6 + $0xdec] ss:$16 sps:$4 sm:$0xff]  }
 0x20b   :  { %3805 = vmatprep.subr.bf16.mxu1 %v6022_v23  ;;  %v6094_v23 = vld [vmem:[#allocation6 + $0xfec] ss:$16 sps:$4 sm:$0xff]  }
 0x20d   :  { %3765 = vmatpush2.bf16.msra.mxu0 %v6017_v24  ;;  %v6089_v24 = vld [vmem:[#allocation6 + $0xde8] ss:$16 sps:$4 sm:$0xff]  }
 0x20e   :  { %3806 = vmatpush2.bf16.msra.mxu1 %v6020_v25  ;;  %3766 = vmatprep.subr.bf16.mxu0 %v6025_v26  ;;  %v6092_v25 = vld [vmem:[#allocation6 + $0xfe8] ss:$16 sps:$4 sm:$0xff]   ;;  %v6097_v26 = vld [vmem:[#allocation6 + $0xdcc] ss:$16 sps:$4 sm:$0xff]  }
 0x20f   :  { %3807 = vmatprep.subr.bf16.mxu1 %v6028_v28  ;;  %v6100_v28 = vld [vmem:[#allocation6 + $0xfcc] ss:$16 sps:$4 sm:$0xff]  }
 0x211   :  { %3767 = vmatpush2.bf16.msra.mxu0 %v6023_v29  ;;  %v6095_v29 = vld [vmem:[#allocation6 + $0xdc8] ss:$16 sps:$4 sm:$0xff]  }
 0x212   :  { %3808 = vmatpush2.bf16.msra.mxu1 %v6026_v31  ;;  %3768 = vmatprep.subr.bf16.mxu0 %v6031_v32  ;;  %v6098_v31 = vld [vmem:[#allocation6 + $0xfc8] ss:$16 sps:$4 sm:$0xff]   ;;  %v6103_v32 = vld [vmem:[#allocation6 + $0xdac] ss:$16 sps:$4 sm:$0xff]  }
 0x213   :  { %3809 = vmatprep.subr.bf16.mxu1 %v6034_v35  ;;  %v6106_v35 = vld [vmem:[#allocation6 + $0xfac] ss:$16 sps:$4 sm:$0xff]  }
 0x215   :  { %3769 = vmatpush2.bf16.msra.mxu0 %v6029_v37  ;;  %v6101_v37 = vld [vmem:[#allocation6 + $0xda8] ss:$16 sps:$4 sm:$0xff]  }
 0x216   :  { %3810 = vmatpush2.bf16.msra.mxu1 %v6032_v21  ;;  %3770 = vmatprep.subr.bf16.mxu0 %v6037_v22  ;;  %v6104_v21 = vld [vmem:[#allocation6 + $0xfa8] ss:$16 sps:$4 sm:$0xff]   ;;  %v6109_v22 = vld [vmem:[#allocation6 + $0xd8c] ss:$16 sps:$4 sm:$0xff]  }
 0x217   :  { %3811 = vmatprep.subr.bf16.mxu1 %v6040_v39  ;;  %v6112_v39 = vld [vmem:[#allocation6 + $0xf8c] ss:$16 sps:$4 sm:$0xff]  }
 0x219   :  { %3771 = vmatpush2.bf16.msra.mxu0 %v6035_v40  ;;  %v6107_v40 = vld [vmem:[#allocation6 + $0xd88] ss:$16 sps:$4 sm:$0xff]  }
 0x21a   :  { %3812 = vmatpush2.bf16.msra.mxu1 %v6038_v42  ;;  %3822 = vmatprep.subr.bf16.mxu0 %v6043_v50  ;;  %v6110_v42 = vld [vmem:[#allocation6 + $0xf88] ss:$16 sps:$4 sm:$0xff]   ;;  %v6115_v50 = vld [vmem:[#allocation6 + $0xd6c] ss:$16 sps:$4 sm:$0xff]  }
 0x21b   :  { %3863 = vmatprep.subr.bf16.mxu1 %v6046_v53  ;;  %v6118_v53 = vld [vmem:[#allocation6 + $0xf6c] ss:$16 sps:$4 sm:$0xff]  }
 0x21c   :  { %v3528_v46 = vpop.f32.mrf.mxu0  ;;  %3773 = vmatmul.mubr.bf16.vlgmr.msra.gmra.mxu0 %v6540_v43 }
 0x21d   :  { %v3569_v47 = vpop.f32.mrf.mxu1  ;;  %3814 = vmatmul.mubr.bf16.vlgmr.msra.gmra.mxu1 %v6542_v44  ;;  %v3529_v48 = vadd.f32 %v3528_v46, %v6585_v36  ;;  %3823 = vmatpush1.bf16.msra.mxu0 %v6041_v45  ;;  %v6053_v36 = vld [vmem:[#allocation6 + $0xca8] ss:$16 sps:$4 sm:$0xff]  }
 0x21e   :  { %3864 = vmatpush1.bf16.msra.mxu1 %v6044_v27  ;;  %v6595_v55 = vpop.f32.mrf.mxu0  ;;  %3824 = vmatprep.subr.bf16.mxu0 %v6049_v30  ;;  %v6113_v45 = vld [vmem:[#allocation6 + $0xd68] ss:$16 sps:$4 sm:$0xff]   ;;  %v6121_v30 = vld [vmem:[#allocation6 + $0xd4c] ss:$16 sps:$4 sm:$0xff]  }
 0x21f   :  { %v6597_v56 = vpop.f32.mrf.mxu1  ;;  %3865 = vmatprep.subr.bf16.mxu1 %v6052_v33  ;;  %v6599_v60 = vadd.f32 %v3569_v47, %v3529_v48  ;;  %3854 = vmatprep.mubr.bf16.mxu0 %v6544_v49  ;;  %v6067_v49 = vld [vmem:[#allocation6 + $0xc6c] ss:$16 sps:$4 sm:$0xff]   ;;  %v6116_v27 = vld [vmem:[#allocation6 + $0xf68] ss:$16 sps:$4 sm:$0xff]  }
 0x220   :  { %3895 = vmatprep.mubr.bf16.mxu1 %v6546_v51  ;;  %v3532_v43 = vpop.f32.mrf.mxu0  ;;  %v6070_v51 = vld [vmem:[#allocation6 + $0xe6c] ss:$16 sps:$4 sm:$0xff]   ;;  %v6119_v46 = vld [vmem:[#allocation6 + $0xd48] ss:$16 sps:$4 sm:$0xff]  }
 0x221   :  { %v3573_v44 = vpop.f32.mrf.mxu1  ;;  %3825 = vmatpush1.bf16.msra.mxu0 %v6047_v52  ;;  %v6124_v33 = vld [vmem:[#allocation6 + $0xf4c] ss:$16 sps:$4 sm:$0xff]   ;;  %v6122_v47 = vld [vmem:[#allocation6 + $0xf48] ss:$16 sps:$4 sm:$0xff]  }
 0x222   :  { %3866 = vmatpush1.bf16.msra.mxu1 %v6050_v54  ;;  %v3533_v62 = vpop.f32.mrf.mxu0  ;;  %3826 = vmatprep.subr.bf16.mxu0 %v6055_v57  ;;  %v6127_v48 = vld [vmem:[#allocation6 + $0xd2c] ss:$16 sps:$4 sm:$0xff]   ;;  %v3531_v54 = vadd.f32 %v6595_v55, %v6590_v4  ;;  %v6125_v57 = vld [vmem:[#allocation6 + $0xd28] ss:$16 sps:$4 sm:$0xff]   ;;  %v682_v55 = vsub.s32 3, %v6552_v58 }
 0x223   :  { %v3574_v63 = vpop.f32.mrf.mxu1  ;;  %3867 = vmatprep.subr.bf16.mxu1 %v6058_v59  ;;  %v6130_v52 = vld [vmem:[#allocation6 + $0xf2c] ss:$16 sps:$4 sm:$0xff]   ;;  %v6128_v59 = vld [vmem:[#allocation6 + $0xf28] ss:$16 sps:$4 sm:$0xff]  }
 0x224   :  { %v6133_v43 = vld [vmem:[#allocation6 + $0xd0c] ss:$16 sps:$4 sm:$0xff]   ;;  %v6134_v62 = vld [vmem:[#allocation6 + $0xf08] ss:$16 sps:$4 sm:$0xff]   ;;  %v678_v63 = vsub.s32 2, %v6552_v58 }
 0x225   :  { %3827 = vmatpush1.bf16.msra.mxu0 %v6053_v36  ;;  %v6136_v44 = vld [vmem:[#allocation6 + $0xf0c] ss:$16 sps:$4 sm:$0xff]   ;;  %v3572_v36 = vadd.f32 %v6597_v56, %v3531_v54  ;;  %v6142_v56 = vld [vmem:[#allocation9 + $0x64] ss:$8 sps:$4 sm:$0xff]  }
 0x226   :  { %3868 = vmatpush1.bf16.msra.mxu1 %v6056_v61  ;;  %3828 = vmatprep.subr.bf16.mxu0 %v6061_v0  ;;  %v6131_v61 = vld [vmem:[#allocation6 + $0xd08] ss:$16 sps:$4 sm:$0xff]  }
 0x227   :  { %3869 = vmatprep.subr.bf16.mxu1 %v6064_v2  ;;  %v6139_v0 = vld [vmem:[#allocation9 + $0x74] ss:$8 sps:$4 sm:$0xff]   ;;  %v6607_v4 = vmax.f32 %v3572_v36, 0.0  ;;  %v6208_v54 = vld [vmem:[#allocation9 + $0x104] ss:$8 sps:$4 sm:$0xff]  }
 0x228   :  { %v6247_v2 = vld [vmem:[#allocation8] sm:$0xf]  ;;  %v6167_v36 = vld [vmem:[#allocation9 + $0xd0] ss:$8 sps:$4 sm:$0xff]  }
 0x229   :  { %3829 = vmatpush1.bf16.msra.mxu0 %v6059_v3  ;;  %v679_v3 = vrot.slane %v6247_v2, %v678_v63  ;;  %v6214_v63 = vld [vmem:[#allocation9 + $0x1e4] ss:$8 sps:$4 sm:$0xff]   ;;  %v4533_v58 = vld [vmem:[%s6849_s7 + $0x1f8] sm:$0xff] }
 0x22a   :  { %3870 = vmatpush1.bf16.msra.mxu1 %v6062_v8  ;;  %3830 = vmatprep.subr.bf16.mxu0 %v6067_v49  ;;  %v6137_v8 = vld [vmem:[#allocation9 + $0x70] ss:$8 sps:$4 sm:$0xff]   ;;  %v3909_v49 = vpack.c.bf16 %v6607_v4, %v6607_v4 }
 0x22b   :  { %3871 = vmatprep.subr.bf16.mxu1 %v6070_v51  ;;  %v683_v51 = vrot.slane %v6247_v2, %v682_v55  ;;  %v6212_v55 = vld [vmem:[#allocation9 + $0x1e0] ss:$8 sps:$4 sm:$0xff]   ;;  %v6175_v2 = vld [vmem:[#allocation9 + $0xb4] ss:$8 sps:$4 sm:$0xff]  }
 0x22d   :  { %3831 = vmatpush1.bf16.msra.mxu0 %v6065_v11 }
 0x22e   :  { %3872 = vmatpush1.bf16.msra.mxu1 %v6068_v12  ;;  %3832 = vmatprep.subr.bf16.mxu0 %v6073_v9 }
 0x22f   :  { %3873 = vmatprep.subr.bf16.mxu1 %v6076_v10  ;;  %v6140_v10 = vld [vmem:[#allocation9 + $0x60] ss:$8 sps:$4 sm:$0xff]  }
 0x231   :  { %3833 = vmatpush1.bf16.msra.mxu0 %v6071_v13 }
 0x232   :  { %3874 = vmatpush1.bf16.msra.mxu1 %v6074_v14  ;;  %3834 = vmatprep.subr.bf16.mxu0 %v6079_v15  ;;  %v6145_v15 = vld [vmem:[#allocation9 + $0x54] ss:$8 sps:$4 sm:$0xff]  }
 0x233   :  { %3875 = vmatprep.subr.bf16.mxu1 %v6082_v16 }
 0x235   :  { %3835 = vmatpush1.bf16.msra.mxu0 %v6077_v34 }
 0x236   :  { %3876 = vmatpush1.bf16.msra.mxu1 %v6080_v17  ;;  %3836 = vmatprep.subr.bf16.mxu0 %v6085_v38 }
 0x237   :  { %3877 = vmatprep.subr.bf16.mxu1 %v6088_v41 }
 0x239   :  { %3837 = vmatpush1.bf16.msra.mxu0 %v6083_v18  ;;  %v6143_v18 = vld [vmem:[#allocation9 + $0x50] ss:$8 sps:$4 sm:$0xff]  }
 0x23a   :  { %3878 = vmatpush1.bf16.msra.mxu1 %v6086_v19  ;;  %3838 = vmatprep.subr.bf16.mxu0 %v6091_v20  ;;  %v6185_v20 = vld [vmem:[#allocation9 + $0x170] ss:$8 sps:$4 sm:$0xff]  }
 0x23b   :  { %3879 = vmatprep.subr.bf16.mxu1 %v6094_v23  ;;  %v6187_v23 = vld [vmem:[#allocation9 + $0x174] ss:$8 sps:$4 sm:$0xff]  }
 0x23d   :  { %3839 = vmatpush2.bf16.msra.mxu0 %v6089_v24  ;;  %v6190_v24 = vld [vmem:[#allocation9 + $0x164] ss:$8 sps:$4 sm:$0xff]  }
 0x23e   :  { %3880 = vmatpush2.bf16.msra.mxu1 %v6092_v25  ;;  %3840 = vmatprep.subr.bf16.mxu0 %v6097_v26  ;;  %v6146_v25 = vld [vmem:[#allocation9 + $0x40] ss:$8 sps:$4 sm:$0xff]  }
 0x23f   :  { %3881 = vmatprep.subr.bf16.mxu1 %v6100_v28  ;;  %v6188_v26 = vld [vmem:[#allocation9 + $0x160] ss:$8 sps:$4 sm:$0xff]   ;;  %v6151_v28 = vld [vmem:[#allocation9 + $0x34] ss:$8 sps:$4 sm:$0xff]  }
 0x241   :  { %3841 = vmatpush2.bf16.msra.mxu0 %v6095_v29  ;;  %v6193_v29 = vld [vmem:[#allocation9 + $0x154] ss:$8 sps:$4 sm:$0xff]  }
 0x242   :  { %3882 = vmatpush2.bf16.msra.mxu1 %v6098_v31  ;;  %3842 = vmatprep.subr.bf16.mxu0 %v6103_v32  ;;  %v6149_v31 = vld [vmem:[#allocation9 + $0x30] ss:$8 sps:$4 sm:$0xff]  }
 0x243   :  { %3883 = vmatprep.subr.bf16.mxu1 %v6106_v35  ;;  %v6191_v32 = vld [vmem:[#allocation9 + $0x150] ss:$8 sps:$4 sm:$0xff]   ;;  %v6154_v35 = vld [vmem:[#allocation9 + $0x24] ss:$8 sps:$4 sm:$0xff]  }
 0x245   :  { %3843 = vmatpush2.bf16.msra.mxu0 %v6101_v37  ;;  %v6196_v37 = vld [vmem:[#allocation9 + $0x144] ss:$8 sps:$4 sm:$0xff]  }
 0x246   :  { %3884 = vmatpush2.bf16.msra.mxu1 %v6104_v21  ;;  %3844 = vmatprep.subr.bf16.mxu0 %v6109_v22  ;;  %v6152_v21 = vld [vmem:[#allocation9 + $0x20] ss:$8 sps:$4 sm:$0xff]  }
 0x247   :  { %3885 = vmatprep.subr.bf16.mxu1 %v6112_v39  ;;  %v6194_v22 = vld [vmem:[#allocation9 + $0x140] ss:$8 sps:$4 sm:$0xff]   ;;  %v6157_v39 = vld [vmem:[#allocation9 + $0x14] ss:$8 sps:$4 sm:$0xff]  }
 0x249   :  { %3845 = vmatpush2.bf16.msra.mxu0 %v6107_v40  ;;  %v6199_v40 = vld [vmem:[#allocation9 + $0x134] ss:$8 sps:$4 sm:$0xff]  }
 0x24a   :  { %3886 = vmatpush2.bf16.msra.mxu1 %v6110_v42  ;;  %3846 = vmatprep.subr.bf16.mxu0 %v6115_v50  ;;  %v6155_v42 = vld [vmem:[#allocation9 + $0x10] ss:$8 sps:$4 sm:$0xff]  }
 0x24b   :  { %3887 = vmatprep.subr.bf16.mxu1 %v6118_v53  ;;  %v6197_v50 = vld [vmem:[#allocation9 + $0x130] ss:$8 sps:$4 sm:$0xff]   ;;  %v6160_v53 = vld [vmem:[#allocation9 + $0x4] ss:$8 sps:$4 sm:$0xff]  }
 0x24d   :  { %3847 = vmatpush2.bf16.msra.mxu0 %v6113_v45  ;;  %v6202_v45 = vld [vmem:[#allocation9 + $0x124] ss:$8 sps:$4 sm:$0xff]  }
 0x24e   :  { %3888 = vmatpush2.bf16.msra.mxu1 %v6116_v27  ;;  %3848 = vmatprep.subr.bf16.mxu0 %v6121_v30  ;;  %v6158_v27 = vld [vmem:[#allocation9] ss:$8 sps:$4 sm:$0xff]  }
 0x24f   :  { %3889 = vmatprep.subr.bf16.mxu1 %v6124_v33  ;;  %v6200_v30 = vld [vmem:[#allocation9 + $0x120] ss:$8 sps:$4 sm:$0xff]   ;;  %v6163_v33 = vld [vmem:[#allocation9 + $0xf4] ss:$8 sps:$4 sm:$0xff]  }
 0x251   :  { %3849 = vmatpush2.bf16.msra.mxu0 %v6119_v46  ;;  %v6205_v46 = vld [vmem:[#allocation9 + $0x114] ss:$8 sps:$4 sm:$0xff]  }
 0x252   :  { %3890 = vmatpush2.bf16.msra.mxu1 %v6122_v47  ;;  %3850 = vmatprep.subr.bf16.mxu0 %v6127_v48  ;;  %v6161_v47 = vld [vmem:[#allocation9 + $0xf0] ss:$8 sps:$4 sm:$0xff]  }
 0x253   :  { %3891 = vmatprep.subr.bf16.mxu1 %v6130_v52  ;;  %v6203_v48 = vld [vmem:[#allocation9 + $0x110] ss:$8 sps:$4 sm:$0xff]   ;;  %v6166_v52 = vld [vmem:[#allocation9 + $0xe4] ss:$8 sps:$4 sm:$0xff]  }
 0x255   :  { %3851 = vmatpush2.bf16.msra.mxu0 %v6125_v57  ;;  %v6164_v57 = vld [vmem:[#allocation9 + $0xe0] ss:$8 sps:$4 sm:$0xff]  }
 0x256   :  { %3892 = vmatpush2.bf16.msra.mxu1 %v6128_v59  ;;  %3852 = vmatprep.subr.bf16.mxu0 %v6133_v43  ;;  %v6206_v59 = vld [vmem:[#allocation9 + $0x100] ss:$8 sps:$4 sm:$0xff]   ;;  %v6169_v43 = vld [vmem:[#allocation9 + $0xd4] ss:$8 sps:$4 sm:$0xff]  }
 0x257   :  { %3893 = vmatprep.subr.bf16.mxu1 %v6136_v44  ;;  %v6211_v44 = vld [vmem:[#allocation9 + $0x1f4] ss:$8 sps:$4 sm:$0xff]  }
 0x259   :  { %3853 = vmatpush2.bf16.msra.mxu0 %v6131_v61  ;;  %v6209_v61 = vld [vmem:[#allocation9 + $0x1f0] ss:$8 sps:$4 sm:$0xff]  }
 0x25a   :  { %3894 = vmatpush2.bf16.msra.mxu1 %v6134_v62  ;;  %4308 = vmatprep.subr.bf16.mxu0 %v6139_v0  ;;  %v6172_v62 = vld [vmem:[#allocation9 + $0xc4] ss:$8 sps:$4 sm:$0xff]   ;;  %v6170_v0 = vld [vmem:[#allocation9 + $0xc0] ss:$8 sps:$4 sm:$0xff]  }
 0x25b   :  { %4349 = vmatprep.subr.bf16.mxu1 %v6187_v23 }
 0x25c   :  { %v3610_v11 = vpop.f32.mrf.mxu0  ;;  %3855 = vmatmul.mubr.bf16.vlgmr.msra.gmra.mxu0 %v6556_v6 }
 0x25d   :  { %v3651_v12 = vpop.f32.mrf.mxu1  ;;  %3896 = vmatmul.mubr.bf16.vlgmr.msra.gmra.mxu1 %v6558_v7  ;;  %v3611_v9 = vadd.f32 %v3610_v11, %v679_v3  ;;  %4309 = vmatpush1.bf16.msra.mxu0 %v6137_v8  ;;  %v6148_v7 = vld [vmem:[#allocation9 + $0x44] ss:$8 sps:$4 sm:$0xff]   ;;  %v6217_v3 = vld [vmem:[#allocation9 + $0x1d4] ss:$8 sps:$4 sm:$0xff]   ;;  %v6173_v8 = vld [vmem:[#allocation9 + $0xb0] ss:$8 sps:$4 sm:$0xff]  }
 0x25e   :  { %4340 = vmatprep.mubr.bf16.mxu0 %v3909_v49  ;;  %v3612_v13 = vpop.f32.mrf.mxu0  ;;  %4310 = vmatprep.subr.bf16.mxu0 %v6142_v56  ;;  %v6215_v56 = vld [vmem:[#allocation9 + $0x1d0] ss:$8 sps:$4 sm:$0xff]   ;;  %v6178_v49 = vld [vmem:[#allocation9 + $0xa4] ss:$8 sps:$4 sm:$0xff]   ;;  %v6176_v11 = vld [vmem:[#allocation9 + $0xa0] ss:$8 sps:$4 sm:$0xff]  }
 0x25f   :  { %v3653_v14 = vpop.f32.mrf.mxu1  ;;  %v6614_v16 = vadd.f32 %v3651_v12, %v3611_v9  ;;  %v3613_v34 = vadd.f32 %v3612_v13, %v683_v51  ;;  %4350 = vmatpush1.bf16.msra.mxu1 %v6185_v20  ;;  %v6220_v51 = vld [vmem:[#allocation9 + $0x1c4] ss:$8 sps:$4 sm:$0xff]   ;;  %v6218_v12 = vld [vmem:[#allocation9 + $0x1c0] ss:$8 sps:$4 sm:$0xff]   ;;  %v6181_v9 = vld [vmem:[#allocation9 + $0x94] ss:$8 sps:$4 sm:$0xff]  }
 0x260   :  { %v3614_v17 = vpop.f32.mrf.mxu0  ;;  %4351 = vmatprep.subr.bf16.mxu1 %v6190_v24  ;;  %v6179_v13 = vld [vmem:[#allocation9 + $0x90] ss:$8 sps:$4 sm:$0xff]  }
 0x261   :  { %v3655_v38 = vpop.f32.mrf.mxu1  ;;  %v6616_v41 = vadd.f32 %v3653_v14, %v3613_v34  ;;  %4311 = vmatpush1.bf16.msra.mxu0 %v6140_v10  ;;  %v6223_v10 = vld [vmem:[#allocation9 + $0x1b4] ss:$8 sps:$4 sm:$0xff]   ;;  %v6221_v14 = vld [vmem:[#allocation9 + $0x1b0] ss:$8 sps:$4 sm:$0xff]   ;;  %v6182_v34 = vld [vmem:[#allocation9 + $0x80] ss:$8 sps:$4 sm:$0xff]  }
 0x262   :  { %v3615_v6 = vpop.f32.mrf.mxu0  ;;  %4312 = vmatprep.subr.bf16.mxu0 %v6145_v15  ;;  %v6184_v15 = vld [vmem:[#allocation9 + $0x84] ss:$8 sps:$4 sm:$0xff]   ;;  %v6619_v17 = vmax.f32 %v6599_v60, 0.0 }
 0x263   :  { %v3656_v19 = vpop.f32.mrf.mxu1  ;;  %4352 = vmatpush1.bf16.msra.mxu1 %v6188_v26  ;;  %v6224_v6 = vld [vmem:[#allocation9 + $0x1a0] ss:$8 sps:$4 sm:$0xff]  }
 0x264   :  { %4353 = vmatprep.subr.bf16.mxu1 %v6193_v29  ;;  %v3908_v38 = vpack.c.bf16 %v6619_v17, %v6619_v17 }
 0x265   :  { %4313 = vmatpush1.bf16.msra.mxu0 %v6143_v18  ;;  %v6226_v18 = vld [vmem:[#allocation9 + $0x1a4] ss:$8 sps:$4 sm:$0xff]  }
 0x266   :  { %4314 = vmatprep.subr.bf16.mxu0 %v6148_v7 }
 0x267   :  { %4354 = vmatpush1.bf16.msra.mxu1 %v6191_v32 }
 0x268   :  { %4355 = vmatprep.subr.bf16.mxu1 %v6196_v37 }
 0x269   :  { %4315 = vmatpush1.bf16.msra.mxu0 %v6146_v25  ;;  %v6229_v25 = vld [vmem:[#allocation9 + $0x194] ss:$8 sps:$4 sm:$0xff]  }
 0x26a   :  { %4316 = vmatprep.subr.bf16.mxu0 %v6151_v28  ;;  %v6227_v28 = vld [vmem:[#allocation9 + $0x190] ss:$8 sps:$4 sm:$0xff]  }
 0x26b   :  { %4356 = vmatpush1.bf16.msra.mxu1 %v6194_v22  ;;  %v6230_v22 = vld [vmem:[#allocation9 + $0x180] ss:$8 sps:$4 sm:$0xff]  }
 0x26c   :  { %4357 = vmatprep.subr.bf16.mxu1 %v6199_v40 }
 0x26d   :  { %4317 = vmatpush1.bf16.msra.mxu0 %v6149_v31 }
 0x26e   :  { %4318 = vmatprep.subr.bf16.mxu0 %v6154_v35 }
 0x26f   :  { %4358 = vmatpush1.bf16.msra.mxu1 %v6197_v50 }
 0x270   :  { %4359 = vmatprep.subr.bf16.mxu1 %v6202_v45 }
 0x271   :  { %4319 = vmatpush1.bf16.msra.mxu0 %v6152_v21  ;;  %v6232_v21 = vld [vmem:[#allocation9 + $0x184] ss:$8 sps:$4 sm:$0xff]  }
 0x272   :  { %4320 = vmatprep.subr.bf16.mxu0 %v6157_v39 }
 0x273   :  { %4360 = vmatpush1.bf16.msra.mxu1 %v6200_v30 }
 0x274   :  { %4361 = vmatprep.subr.bf16.mxu1 %v6205_v46 }
 0x275   :  { %4321 = vmatpush1.bf16.msra.mxu0 %v6155_v42 }
 0x276   :  { %4322 = vmatprep.subr.bf16.mxu0 %v6160_v53 }
 0x277   :  { %4362 = vmatpush1.bf16.msra.mxu1 %v6203_v48 }
 0x278   :  { %4363 = vmatprep.subr.bf16.mxu1 %v6208_v54 }
 0x279   :  { %4323 = vmatpush1.bf16.msra.mxu0 %v6158_v27 }
 0x27a   :  { %4324 = vmatprep.subr.bf16.mxu0 %v6163_v33 }
 0x27b   :  { %4364 = vmatpush1.bf16.msra.mxu1 %v6206_v59 }
 0x27c   :  { %4365 = vmatprep.subr.bf16.mxu1 %v6211_v44 }
 0x27d   :  { %4325 = vmatpush2.bf16.msra.mxu0 %v6161_v47 }
 0x27e   :  { %4326 = vmatprep.subr.bf16.mxu0 %v6166_v52 }
 0x27f   :  { %4366 = vmatpush2.bf16.msra.mxu1 %v6209_v61 }
 0x280   :  { %4367 = vmatprep.subr.bf16.mxu1 %v6214_v63 }
 0x281   :  { %4327 = vmatpush2.bf16.msra.mxu0 %v6164_v57 }
 0x282   :  { %4328 = vmatprep.subr.bf16.mxu0 %v6169_v43 }
 0x283   :  { %4368 = vmatpush2.bf16.msra.mxu1 %v6212_v55 }
 0x284   :  { %4369 = vmatprep.subr.bf16.mxu1 %v6217_v3 }
 0x285   :  { %4329 = vmatpush2.bf16.msra.mxu0 %v6167_v36 }
 0x286   :  { %4330 = vmatprep.subr.bf16.mxu0 %v6172_v62 }
 0x287   :  { %4370 = vmatpush2.bf16.msra.mxu1 %v6215_v56 }
 0x288   :  { %4371 = vmatprep.subr.bf16.mxu1 %v6220_v51 }
 0x289   :  { %4331 = vmatpush2.bf16.msra.mxu0 %v6170_v0 }
 0x28a   :  { %4332 = vmatprep.subr.bf16.mxu0 %v6175_v2 }
 0x28b   :  { %4372 = vmatpush2.bf16.msra.mxu1 %v6218_v12 }
 0x28c   :  { %4373 = vmatprep.subr.bf16.mxu1 %v6223_v10 }
 0x28d   :  { %4333 = vmatpush2.bf16.msra.mxu0 %v6173_v8 }
 0x28e   :  { %4334 = vmatprep.subr.bf16.mxu0 %v6178_v49 }
 0x28f   :  { %4374 = vmatpush2.bf16.msra.mxu1 %v6221_v14 }
 0x290   :  { %4375 = vmatprep.subr.bf16.mxu1 %v6226_v18 }
 0x291   :  { %4335 = vmatpush2.bf16.msra.mxu0 %v6176_v11  ;;  %v3976_v11 = vld [vmem:[#allocation11] sm:$0x3] }
 0x292   :  { %4336 = vmatprep.subr.bf16.mxu0 %v6181_v9  ;;  %v3985_v12 = vrot.slane %v3976_v11, %v674_v5  ;;  %v3981_v18 = vrot.slane %v3976_v11, %v670_v1  ;;  %v5282_v5 = vld [vmem:[#allocation12] ss:$0 sm:$0xff]  ;;  %v4485_v1 = vld [vmem:[%s6849_s7 + $0x78] sm:$0xff] }
 0x293   :  { %4376 = vmatpush2.bf16.msra.mxu1 %v6224_v6 }
 0x294   :  { %4377 = vmatprep.subr.bf16.mxu1 %v6229_v25 }
 0x295   :  { %4337 = vmatpush2.bf16.msra.mxu0 %v6179_v13 }
 0x296   :  { %4338 = vmatprep.subr.bf16.mxu0 %v6184_v15 }
 0x297   :  { %4378 = vmatpush2.bf16.msra.mxu1 %v6227_v28  ;;  %v4501_v28 = vld [vmem:[%s6849_s7 + $0xf8] sm:$0xff] }
 0x298   :  { %4379 = vmatprep.subr.bf16.mxu1 %v6232_v21  ;;  %v4499_v21 = vld [vmem:[%s6849_s7 + $0xe8] sm:$0xff] }
 0x299   :  { %4339 = vmatpush2.bf16.msra.mxu0 %v6182_v34 }
 0x29a   :  { %5285 = vmatprep.subr.mxu0 %v4501_v28  ;;  %v4508_v28 = vld [vmem:[%s6849_s7 + $0x130] sm:$0xff] }
 0x29b   :  { %4380 = vmatpush2.bf16.msra.mxu1 %v6230_v22  ;;  %v4531_v22 = vld [vmem:[%s6849_s7 + $0x1e8] sm:$0xff] }
 0x29c   :  { %v3692_v19 = vpop.f32.mrf.mxu0  ;;  %4341 = vmatmul.mubr.bf16.vlgmr.msra.gmra.mxu0 %v3908_v38  ;;  %5320 = vmatprep.subr.mxu1 %v4533_v58 }
 0x29d   :  { %v3733_v7 = vpop.f32.mrf.mxu1  ;;  %v3693_v20 = vadd.f32 %v3692_v19, %v6614_v16  ;;  %5286 = vmatpush3.msra.mxu0 %v4485_v1  ;;  %v4491_v1 = vld [vmem:[%s6849_s7 + $0xa8] sm:$0xff] }
 0x29e   :  { %v3694_v23 = vpop.f32.mrf.mxu0 }
 0x29f   :  { %v3735_v24 = vpop.f32.mrf.mxu1  ;;  %v3734_v26 = vadd.f32 %v3733_v7, %v3693_v20  ;;  %v3695_v60 = vadd.f32 %v3694_v23, %v6616_v41 }
 0x2a0   :  { %v3696_v29 = vpop.f32.mrf.mxu0 }
 0x2a1   :  { %v3737_v31 = vpop.f32.mrf.mxu1  ;;  %v3736_v32 = vadd.f32 %v3735_v24, %v3695_v60  ;;  %v6429_v60 = vmov 0   ;;  %v4517_v29 = vld [vmem:[%s6849_s7 + $0x178] sm:$0xff] }
 0x2a2   :  { %v3697_v35 = vpop.f32.mrf.mxu0  ;;  %5368 = vset.pattern.permute.xlu0 %v6429_v60  ;;  %v4500_v31 = vld [vmem:[%s6849_s7 + $0xf0] sm:$0xff] }
 0x2a3   :  { %v3738_v37 = vpop.f32.mrf.mxu1  ;;  %v4484_v35 = vld [vmem:[%s6849_s7 + $0x70] sm:$0xff]  ;;  %5287 = vmatprep.subr.mxu0 %v4500_v31  ;;  %v4475_v31 = vld [vmem:[%s6849_s7 + $0x28] sm:$0xff] }
 0x2a4   :  { %v4516_v37 = vld [vmem:[%s6849_s7 + $0x170] sm:$0xff]  ;;  %5288 = vmatpush3.msra.mxu0 %v4484_v35  ;;  %v4490_v35 = vld [vmem:[%s6849_s7 + $0xa0] sm:$0xff] }
 0x2a5   :  { %5289 = vmatprep.subr.mxu0 %v4499_v21  ;;  %v4476_v60 = vld [vmem:[%s6849_s7 + $0x30] sm:$0xff]  ;;  %v4474_v21 = vld [vmem:[%s6849_s7 + $0x20] sm:$0xff] }
 0x2dc   :  { %v3774_v16 = vpop.f32.mrf.mxu0 }
 0x2dd   :  { %v3815_v39 = vpop.f32.mrf.mxu1  ;;  %v3775_v40 = vadd.f32 %v3774_v16, %v3734_v26  ;;  %v4483_v16 = vld [vmem:[%s6849_s7 + $0x68] sm:$0xff] }
 0x2de   :  { %v3776_v42 = vpop.f32.mrf.mxu0  ;;  %5290 = vmatpush3.msra.mxu0 %v4483_v16  ;;  %v4489_v16 = vld [vmem:[%s6849_s7 + $0x98] sm:$0xff] }
 0x2df   :  { %v3817_v50 = vpop.f32.mrf.mxu1  ;;  %v3816_v53 = vadd.f32 %v3815_v39, %v3775_v40  ;;  %v3777_v33 = vadd.f32 %v3776_v42, %v3736_v32  ;;  %v4532_v32 = vld [vmem:[%s6849_s7 + $0x1f0] sm:$0xff]  ;;  %v4515_v39 = vld [vmem:[%s6849_s7 + $0x168] sm:$0xff]  ;;  %v4498_v40 = vld [vmem:[%s6849_s7 + $0xe0] sm:$0xff] }
 0x2e0   :  { %v3778_v45 = vpop.f32.mrf.mxu0  ;;  %v4530_v42 = vld [vmem:[%s6849_s7 + $0x1e0] sm:$0xff]  ;;  %5291 = vmatprep.subr.mxu0 %v4498_v40  ;;  %v4473_v40 = vld [vmem:[%s6849_s7 + $0x18] sm:$0xff] }
 0x2e1   :  { %v3819_v41 = vpop.f32.mrf.mxu1  ;;  %v3818_v48 = vadd.f32 %v3817_v50, %v3777_v33  ;;  %v4482_v50 = vld [vmem:[%s6849_s7 + $0x60] sm:$0xff]  ;;  %v4497_v45 = vld [vmem:[%s6849_s7 + $0xd8] sm:$0xff]  ;;  %v4496_v33 = vld [vmem:[%s6849_s7 + $0xd0] sm:$0xff] }
 0x2e2   :  { %v3779_v27 = vpop.f32.mrf.mxu0  ;;  %v4529_v41 = vld [vmem:[%s6849_s7 + $0x1d8] sm:$0xff]  ;;  %5292 = vmatpush3.msra.mxu0 %v4482_v50  ;;  %v4488_v50 = vld [vmem:[%s6849_s7 + $0x90] sm:$0xff] }
 0x2e3   :  { %v3820_v30 = vpop.f32.mrf.mxu1  ;;  %v4481_v27 = vld [vmem:[%s6849_s7 + $0x58] sm:$0xff]  ;;  %5293 = vmatprep.subr.mxu0 %v4497_v45  ;;  %v4472_v45 = vld [vmem:[%s6849_s7 + $0x10] sm:$0xff] }
 0x2e4   :  { %v4513_v30 = vld [vmem:[%s6849_s7 + $0x158] sm:$0xff]  ;;  %5294 = vmatpush3.msra.mxu0 %v4481_v27  ;;  %v4487_v27 = vld [vmem:[%s6849_s7 + $0x88] sm:$0xff] }
 0x2e5   :  { %5295 = vmatprep.subr.mxu0 %v4496_v33  ;;  %v4471_v33 = vld [vmem:[%s6849_s7 + $0x8] sm:$0xff] }
 0x31c   :  { %v3856_v46 = vpop.f32.mrf.mxu0 }
 0x31d   :  { %v3897_v47 = vpop.f32.mrf.mxu1  ;;  %v3857_v52 = vadd.f32 %v3856_v46, %v3816_v53  ;;  %v4514_v53 = vld [vmem:[%s6849_s7 + $0x160] sm:$0xff]  ;;  %v4528_v46 = vld [vmem:[%s6849_s7 + $0x1d0] sm:$0xff] }
 0x31e   :  { %v3858_v54 = vpop.f32.mrf.mxu0 }
 0x31f   :  { %v3899_v57 = vpop.f32.mrf.mxu1  ;;  %v3898_v59 = vadd.f32 %v3897_v47, %v3857_v52  ;;  %v3859_v43 = vadd.f32 %v3858_v54, %v3818_v48  ;;  %v4480_v47 = vld [vmem:[%s6849_s7 + $0x50] sm:$0xff]  ;;  %v4495_v52 = vld [vmem:[%s6849_s7 + $0xc8] sm:$0xff] }
 0x320   :  { %v3860_v44 = vpop.f32.mrf.mxu0  ;;  %v4512_v48 = vld [vmem:[%s6849_s7 + $0x150] sm:$0xff]  ;;  %v4527_v54 = vld [vmem:[%s6849_s7 + $0x1c8] sm:$0xff]  ;;  %5296 = vmatpush3.msra.mxu0 %v4480_v47  ;;  %v4486_v47 = vld [vmem:[%s6849_s7 + $0x80] sm:$0xff] }
 0x321   :  { %v3901_v36 = vpop.f32.mrf.mxu1  ;;  %v3900_v61 = vadd.f32 %v3899_v57, %v3859_v43  ;;  %v6625_v62 = vmax.f32 %v3898_v59, 0.0  ;;  %v4479_v57 = vld [vmem:[%s6849_s7 + $0x48] sm:$0xff]  ;;  %v4494_v43 = vld [vmem:[%s6849_s7 + $0xc0] sm:$0xff]  ;;  %5297 = vmatprep.subr.mxu0 %v4495_v52 }
 0x322   :  { %v3861_v63 = vpop.f32.mrf.mxu0  ;;  %v4511_v59 = vld [vmem:[%s6849_s7 + $0x148] sm:$0xff]  ;;  %v4526_v44 = vld [vmem:[%s6849_s7 + $0x1c0] sm:$0xff]  ;;  %5298 = vmatpush3.msra.mxu0 %v4479_v57 }
 0x323   :  { %v3902_v0 = vpop.f32.mrf.mxu1  ;;  %v6627_v55 = vmax.f32 %v3900_v61, 0.0  ;;  %v3910_v3 = vpack.c.bf16 %v6625_v62, %v6625_v62  ;;  %v4478_v36 = vld [vmem:[%s6849_s7 + $0x40] sm:$0xff]  ;;  %v4493_v63 = vld [vmem:[%s6849_s7 + $0xb8] sm:$0xff]  ;;  %5299 = vmatprep.subr.mxu0 %v4494_v43 }
 0x324   :  { %v4510_v61 = vld [vmem:[%s6849_s7 + $0x140] sm:$0xff]  ;;  %v4525_v0 = vld [vmem:[%s6849_s7 + $0x1b8] sm:$0xff]  ;;  %5300 = vmatpush3.msra.mxu0 %v4478_v36 }
 0x325   :  { %v3911_v2 = vpack.c.bf16 %v6627_v55, %v6627_v55  ;;  %5301 = vmatprep.subr.mxu0 %v4493_v63  ;;  %v4470_v52 = vld [vmem:[%s6849_s7] sm:$0xff] }
 0x327   :  { %4381 = vmatprep.mubr.bf16.mxu1 %v3911_v2  ;;  %v5283_v2 = vld [vmem:[#allocation2] ss:$0 sm:$0xff] }
 0x328   :  { %4382 = vmatmul.mubr.bf16.vlgmr.msra.gmra.mxu1 %v3910_v3 }
 0x329   :  { %5321 = vmatpush3.msra.mxu1 %v4517_v29  ;;  %v4523_v29 = vld [vmem:[%s6849_s7 + $0x1a8] sm:$0xff] }
 0x32a   :  { %5322 = vmatprep.subr.mxu1 %v4532_v32  ;;  %v4507_v32 = vld [vmem:[%s6849_s7 + $0x128] sm:$0xff] }
 0x32b   :  { %5323 = vmatpush3.msra.mxu1 %v4516_v37  ;;  %v4522_v37 = vld [vmem:[%s6849_s7 + $0x1a0] sm:$0xff] }
 0x32c   :  { %5324 = vmatprep.subr.mxu1 %v4531_v22  ;;  %v4506_v22 = vld [vmem:[%s6849_s7 + $0x120] sm:$0xff] }
 0x32d   :  { %5325 = vmatpush3.msra.mxu1 %v4515_v39  ;;  %v4521_v39 = vld [vmem:[%s6849_s7 + $0x198] sm:$0xff] }
 0x32e   :  { %5326 = vmatprep.subr.mxu1 %v4530_v42  ;;  %v4505_v42 = vld [vmem:[%s6849_s7 + $0x118] sm:$0xff] }
 0x32f   :  { %5327 = vmatpush3.msra.mxu1 %v4514_v53  ;;  %v4520_v53 = vld [vmem:[%s6849_s7 + $0x190] sm:$0xff] }
 0x330   :  { %5328 = vmatprep.subr.mxu1 %v4529_v41  ;;  %v4504_v41 = vld [vmem:[%s6849_s7 + $0x110] sm:$0xff] }
 0x331   :  { %5329 = vmatpush3.msra.mxu1 %v4513_v30  ;;  %v4519_v30 = vld [vmem:[%s6849_s7 + $0x188] sm:$0xff] }
 0x332   :  { %5330 = vmatprep.subr.mxu1 %v4528_v46  ;;  %v4503_v46 = vld [vmem:[%s6849_s7 + $0x108] sm:$0xff] }
 0x333   :  { %5331 = vmatpush3.msra.mxu1 %v4512_v48  ;;  %v4518_v48 = vld [vmem:[%s6849_s7 + $0x180] sm:$0xff] }
 0x334   :  { %5332 = vmatprep.subr.mxu1 %v4527_v54  ;;  %v4502_v54 = vld [vmem:[%s6849_s7 + $0x100] sm:$0xff] }
 0x335   :  { %5333 = vmatpush3.msra.mxu1 %v4511_v59 }
 0x336   :  { %5334 = vmatprep.subr.mxu1 %v4526_v44 }
 0x337   :  { %5335 = vmatpush3.msra.mxu1 %v4510_v61 }
 0x338   :  { %5336 = vmatprep.subr.mxu1 %v4525_v0 }
 0x35c   :  { %v4342_v8 = vpop.f32.mrf.mxu0 }
 0x35d   :  { %v4343_v6 = vadd.f32 %v4342_v8, %v3981_v18 }
 0x35e   :  { %v4344_v56 = vpop.f32.mrf.mxu0 }
 0x35f   :  { %v4345_v10 = vadd.f32 %v4344_v56, %v3985_v12 }
 0x360   :  { %v4346_v49 = vpop.f32.mrf.mxu0 }
 0x362   :  { %v4347_v51 = vpop.f32.mrf.mxu0 }
 0x3e8   :  { %v4383_v9 = vpop.f32.mrf.mxu1 }
 0x3e9   :  { %v4384_v19 = vadd.f32 %v4383_v9, %v4343_v6 }
 0x3ea   :  { %v4385_v13 = vpop.f32.mrf.mxu1 }
 0x3eb   :  { %v4386_v14 = vadd.f32 %v4385_v13, %v4345_v10 }
 0x3ec   :  { %v4387_v15 = vpop.f32.mrf.mxu1 }
 0x3ed   :  { %v5281_v34 = vmul.f32 -1.442695, %v4386_v14 }
 0x3ee   :  { %v4388_v38 = vpop.f32.mrf.mxu1 }
 0x3ef   :  { %6233 = vpow2.f32 %v5281_v34 }
 0x3f0   :  { %6235 = vtanh.f32 %v4384_v19 }
 0x3fc   :  { %v6234_v7 = vpop.eup %6233 }
 0x3fd   :  { %v4394_v20 = vadd.f32 1.0, %v6234_v7  ;;  %v6236_v23 = vpop.eup %6235 }
 0x3ff   :  { %6237 = vrcp.f32 %v4394_v20 }
 0x40c   :  { %v6238_v24 = vpop.eup %6237 }
 0x40d   :  { %v4397_v25 = vmul.f32 %v6238_v24, %v6236_v23  ;;  %v4477_v23 = vld [vmem:[%s6849_s7 + $0x38] sm:$0xff] }
 0x40e   :  { %v4509_v24 = vld [vmem:[%s6849_s7 + $0x138] sm:$0xff]  ;;  %5302 = vmatpush3.msra.mxu0 %v4477_v23 }
 0x40f   :  { %v4405_v26 = vmul.f32 %v5282_v5, %v4397_v25  ;;  %5337 = vmatpush3.msra.mxu1 %v4509_v24  ;;  %v4492_v5 = vld [vmem:[%s6849_s7 + $0xb0] sm:$0xff] }
 0x410   :  { %v4524_v25 = vld [vmem:[%s6849_s7 + $0x1b0] sm:$0xff]  ;;  %5303 = vmatprep.subr.mxu0 %v4492_v5  ;;  %s6430_s7 = smov [#allocation15]  }
 0x411   :  { %4406 = vadd.xlane.f32.xlu0 %v4405_v26  ;;  %5338 = vmatprep.subr.mxu1 %v4524_v25  ;;  %s4689_s6 = sshll.u32 %s6430_s7, 4  ;;  %s4690_s6 = int_to_ptr.vmem [resolvable:$true] %s4689_s6 }
 0x412   :  { %5304 = vmatpush3.msra.mxu0 %v4476_v60  ;;  %5339 = vmatpush3.msra.mxu1 %v4508_v28  ;;  %s6388_s5 = scalar_lea.vmem %s4690_s6, 16  ;;  %s6392_s21 = scalar_lea.vmem %s4690_s6, 32 }
 0x413   :  { %5305 = vmatprep.subr.mxu0 %v4491_v1  ;;  %5340 = vmatprep.subr.mxu1 %v4523_v29  ;;  %p6389_p7 = scmp.ne.s32.totalorder %s4690_s6, %s6388_s5  ;;  %p6393_p8 = scmp.lt.s32.totalorder %s4690_s6, %s4690_s6 }
 0x414   :  { %5306 = vmatpush3.msra.mxu0 %v4475_v31  ;;  %5341 = vmatpush3.msra.mxu1 %v4507_v32  ;;  %p6394_p9 = scmp.lt.s32.totalorder %s6392_s21, %s6388_s5 }
 0x415   :  { %5307 = vmatprep.subr.mxu0 %v4490_v35  ;;  %5342 = vmatprep.subr.mxu1 %v4522_v37 }
 0x416   :  { %5308 = vmatpush3.msra.mxu0 %v4474_v21  ;;  %5343 = vmatpush3.msra.mxu1 %v4506_v22  ;;  %p6395_p10 = por %p6394_p9, %p6393_p8 }
 0x417   :  { %5309 = vmatprep.subr.mxu0 %v4489_v16  ;;  %5344 = vmatprep.subr.mxu1 %v4521_v39 }
 0x418   :  { %5310 = vmatpush3.msra.mxu0 %v4473_v40  ;;  %5345 = vmatpush3.msra.mxu1 %v4505_v42  ;;  %p6396_p11 = pnand %p6395_p10, %p6389_p7 }
 0x419   :  { %5311 = vmatprep.subr.mxu0 %v4488_v50  ;;  %5346 = vmatprep.subr.mxu1 %v4520_v53 }
 0x41a   :  { %5312 = vmatpush3.msra.mxu0 %v4472_v45  ;;  %5347 = vmatpush3.msra.mxu1 %v4504_v41 }
 0x41b   :  { %5313 = vmatprep.subr.mxu0 %v4487_v27  ;;  %5348 = vmatprep.subr.mxu1 %v4519_v30 }
 0x41c   :  { %5314 = vmatpush3.msra.mxu0 %v4471_v33  ;;  %5349 = vmatpush3.msra.mxu1 %v4503_v46 }
 0x41d   :  { %5315 = vmatprep.subr.mxu0 %v4486_v47  ;;  %5350 = vmatprep.subr.mxu1 %v4518_v48 }
 0x41e   :  { %5316 = vmatpush3.msra.mxu0 %v4470_v52  ;;  %5351 = vmatpush3.msra.mxu1 %v4502_v54 }
 0x49a   :  { %v4407_v3 = vpop.xlane.xlu0 %4406 }
 0x49b   :  { %v4415_v8 = vadd.f32 %v5283_v2, %v4407_v3 }
 0x49d   :  { %v4417_v56 = vsel %vm4416_vm0, %v4415_v8, -inf }
 0x49e   :  { %v4418_v49 = vrot.slane %v4417_v56, 4 }
 0x4a0   :  { %v4419_v51 = vmax.f32 %v4417_v56, %v4418_v49 }
 0x4a2   :  { %v4420_v11 = vrot.slane %v4419_v51, 2 }
 0x4a4   :  { %v4421_v12 = vmax.f32 %v4419_v51, %v4420_v11 }
 0x4a6   :  { %v4422_v9 = vrot.slane %v4421_v12, 1 }
 0x4a8   :  { %v4423_v10 = vmax.f32 %v4421_v12, %v4422_v9 }
 0x4aa   :  { %v4424_v13 = vsub.f32 %v4415_v8, %v4423_v10 }
 0x4ac   :  { %v4425_v14 = vmul.f32 1.442695, %v4424_v13 }
 0x4ae   :  { %6239 = vpow2.f32 %v4425_v14 }
 0x4bb   :  { %v6240_v15 = vpop.eup %6239 }
 0x4bc   :  { %v4427_v34 = vsel %vm4416_vm0, %v6240_v15, 0.0 }
 0x4bd   :  { %v4428_v38 = vrot.slane %v4427_v34, 4 }
 0x4bf   :  { %v4429_v18 = vadd.f32 %v4428_v38, %v4427_v34 }
 0x4c1   :  { %v4430_v6 = vrot.slane %v4429_v18, 2 }
 0x4c3   :  { %v4431_v19 = vadd.f32 %v4430_v6, %v4429_v18 }
 0x4c5   :  { %v4432_v7 = vrot.slane %v4431_v19, 1 }
 0x4c7   :  { %v4433_v20 = vadd.f32 %v4432_v7, %v4431_v19 }
 0x4c9   :  { %6241 = vrcp.f32 %v4433_v20  ;;  %v4534_v20 = vld [vmem:[#allocation14] sm:$0x1] }
 0x4d6   :  { %v6242_v26 = vpop.eup %6241 }
 0x4d7   :  { %v4435_v58 = vmul.f32 %v6242_v26, %v6240_v15 }
 0x4d9   :  { %4439 = vperm.xlu0 %5368, %v4435_v58   ;;  %4436 = vst.msk [vmem:[%s6852_s10] sm:$0xff] %vm4416_vm0, %v4435_v58 }
 0x554   :  { %v4440_v57 = vpop.permute.xlu0 %4439 }
 0x555   :  { %v4442_v59 = vmul.f32 %v4440_v57, %v6619_v17  ;;  %v4443_v43 = vmul.f32 %v4440_v57, %v6607_v4  ;;  %v4444_v44 = vmul.f32 %v4440_v57, %v6625_v62  ;;  %v4445_v36 = vmul.f32 %v4440_v57, %v6627_v55 }
 0x557   :  { %v4446_v61 = vrot.slane %v4442_v59, 4  ;;  %v4452_v63 = vrot.slane %v4443_v43, 4  ;;  %v4458_v0 = vrot.slane %v4444_v44, 4  ;;  %v4464_v2 = vrot.slane %v4445_v36, 4 }
 0x559   :  { %v4447_v3 = vadd.f32 %v4446_v61, %v4442_v59  ;;  %v4453_v8 = vadd.f32 %v4452_v63, %v4443_v43  ;;  %v4459_v56 = vadd.f32 %v4458_v0, %v4444_v44  ;;  %v4465_v49 = vadd.f32 %v4464_v2, %v4445_v36 }
 0x55b   :  { %v4448_v51 = vrot.slane %v4447_v3, 2  ;;  %v4454_v11 = vrot.slane %v4453_v8, 2  ;;  %v4460_v12 = vrot.slane %v4459_v56, 2  ;;  %v4466_v9 = vrot.slane %v4465_v49, 2 }
 0x55d   :  { %v4449_v10 = vadd.f32 %v4448_v51, %v4447_v3  ;;  %v4461_v17 = vadd.f32 %v4460_v12, %v4459_v56  ;;  %v4455_v13 = vadd.f32 %v4454_v11, %v4453_v8  ;;  %v4467_v4 = vadd.f32 %v4466_v9, %v4465_v49 }
 0x55f   :  { %v4456_v14 = vrot.slane %v4455_v13, 1  ;;  %v4468_v62 = vrot.slane %v4467_v4, 1  ;;  %v4450_v15 = vrot.slane %v4449_v10, 1  ;;  %v4462_v55 = vrot.slane %v4461_v17, 1 }
 0x561   :  { %v4457_v34 = vadd.f32 %v4456_v14, %v4455_v13  ;;  %v4469_v38 = vadd.f32 %v4468_v62, %v4467_v4  ;;  %v4451_v18 = vadd.f32 %v4450_v15, %v4449_v10  ;;  %v4463_v6 = vadd.f32 %v4462_v55, %v4461_v17 }
 0x563   :  { %4599 = vmatprep.mubr.f32.mxu0 %v4457_v34  ;;  %4669 = vmatprep.mubr.f32.mxu1 %v4469_v38 }
 0x564   :  { %4600 = vmatmul.mubr.f32.vlgmr.msra.gmra.mxu0 %v4451_v18  ;;  %4670 = vmatmul.mubr.f32.vlgmr.msra.gmra.mxu1 %v4463_v6 }
 0x624   :  { %v5317_v19 = vpop.f32.mrf.mxu0  ;;  %v5352_v7 = vpop.f32.mrf.mxu1 }
 0x626   :  { %v5318_v23 = vpop.f32.mrf.mxu0  ;;  %v5353_v24 = vpop.f32.mrf.mxu1 }
 0x627   :  { %v5319_v5 = vadd.f32 %v5318_v23, %v5317_v19  ;;  %v5354_v26 = vadd.f32 %v5353_v24, %v5352_v7 }
 0x629   :  { %v4602_v25 = vadd.f32 %v5319_v5, %v4534_v20 }
 0x62b   :  { %v4672_v60 = vadd.f32 %v5354_v26, %v4602_v25 }
 0x62d   :  { %v5284_v28 = vmul.f32 -1.442695, %v4672_v60 }
 0x62f   :  { %6243 = vpow2.f32 %v5284_v28 }
 0x63c   :  { %v6244_v58 = vpop.eup %6243 }
 0x63d   :  { %v4678_v1 = vadd.f32 1.0, %v6244_v58 }
 0x63f   :  { %6245 = vrcp.f32 %v4678_v1 }
 0x64c   :  { %v6246_v29 = vpop.eup %6245 }
 0x64d   :  { %4682 = vst.msk [vmem:[#allocation15] sm:$0x1] %vm4681_vm1, %v6246_v29 }
 0x64e   :  { %6399 = shalt.err (!%p6396_p11)
}
 0x64f   :  { %4692 = dma.vmem_to_hbm [thread:$0]  %s4690_s6, 16, %s6851_s9, [#allocation5]  }
 0x650   :  { %6416 = dma.done.wait [#allocation5], 16  }
 0x651   :  { %6417 = vsyncadd [#allocation5], 4294967280 }
 0x652   :  { %4700 = vsyncpa [#allocation4], 1 }
 0x653   :  { %4701 = vsyncpa [#allocation7], 1 }
 0x654   :  { %4702 = vsyncpa [#allocation10], 1 }
 0x655   :  { %4703 = vsyncpa [#allocation13], 1 }
 0x656   :  { %4704 = vsyncpa [#allocation5], 1 }

</bundles_post_ra>
